<compile_context>
chip_gen: v7x
topology: tpu7x:2x2x1
jax: 0.10.0
libtpu: 0.0.40
codegen_flags: <defaults>
</compile_context>

<pallas_src>
import functools

import jax
import jax.numpy as jnp
from jax.experimental import pallas as pl
from jax.experimental.pallas import tpu as pltpu

HIDDEN = 512


def _round_up(n, m):
    return ((n + m - 1) // m) * m


def _softmax(v, *, approx):
    m = jnp.max(v, axis=-1, keepdims=True)
    e = jnp.exp(v - m)
    return e * pl.reciprocal(jnp.sum(e, axis=-1, keepdims=True), approx=approx)


def _softplus(v):
    # numerically stable log(1 + exp(v))
    return jnp.maximum(v, 0.0) + jnp.log1p(jnp.exp(-jnp.abs(v)))


def inference_kernel(x_ref, noise_ref,
                     w1_ref, b1_ref, w2_ref, b2_ref, wl_ref, bl_ref,
                     w3x_ref, w3y_ref, b3_ref, w4_ref, b4_ref, wh_ref, bh_ref,
                     logits_ref, prob_ref, y_ref, mu_ref, var_ref, z_ref,
                     *, inv_temp, y_dim, z_dim):
    f32 = jnp.float32
    bf16 = jnp.bfloat16
    x = x_ref[...].astype(bf16)
    gumbel = noise_ref[:, :y_dim]          # static lane slices of the packed
    normal = noise_ref[:, y_dim:]          # noise input

    # ---- q(y|x): Linear(512) -> ReLU -> Linear(512) -> ReLU -> GumbelSoftmax
    h1 = jnp.maximum(
        jnp.dot(x, w1_ref[...], preferred_element_type=f32) + b1_ref[...], 0.0)
    h2 = jnp.maximum(
        jnp.dot(h1.astype(bf16), w2_ref[...], preferred_element_type=f32)
        + b2_ref[...], 0.0)
    logits = (jnp.dot(h2.astype(bf16), wl_ref[...], preferred_element_type=f32)
              + bl_ref[...])
    logits_ref[...] = logits
    prob_ref[...] = _softmax(logits, approx=False)        # exact sum-to-one
    # soft gumbel-softmax sample (hard=0 in the reference forward)
    # TODO(synk): hard=True straight-through one-hot branch not implemented.
    y = _softmax((logits + gumbel) * inv_temp, approx=True)
    y_ref[...] = y

    # ---- q(z|x,y): torch concat(x,y) replaced by split-weight sum ----
    h3 = jnp.maximum(
        jnp.dot(x, w3x_ref[...], preferred_element_type=f32)
        + jnp.dot(y.astype(bf16), w3y_ref[...], preferred_element_type=f32)
        + b3_ref[...], 0.0)
    h4 = jnp.maximum(
        jnp.dot(h3.astype(bf16), w4_ref[...], preferred_element_type=f32)
        + b4_ref[...], 0.0)
    # merged mu/var head: one [512, 2*z_dim] matmul, then static lane slices
    head = (jnp.dot(h4.astype(bf16), wh_ref[...], preferred_element_type=f32)
            + bh_ref[...])
    mu = head[:, :z_dim]
    var = _softplus(head[:, z_dim:])
    mu_ref[...] = mu
    var_ref[...] = var
    z_ref[...] = mu + normal * jnp.sqrt(var + 1e-10)


def _linear_init(key, fan_in, fan_out):
    # PyTorch nn.Linear default: U(-1/sqrt(fan_in), 1/sqrt(fan_in))
    kw, kb = jax.random.split(key)
    bound = 1.0 / (fan_in ** 0.5)
    w = jax.random.uniform(kw, (fan_in, fan_out), jnp.float32, -bound, bound)
    b = jax.random.uniform(kb, (1, fan_out), jnp.float32, -bound, bound)
    return w, b


def init_inference_net(key, x_dim, z_dim, y_dim):
    """Parameters in the PyTorch layout (all f32)."""
    keys = jax.random.split(key, 7)
    p = {}
    p["w1"], p["b1"] = _linear_init(keys[0], x_dim, HIDDEN)
    p["w2"], p["b2"] = _linear_init(keys[1], HIDDEN, HIDDEN)
    p["wl"], p["bl"] = _linear_init(keys[2], HIDDEN, y_dim)
    p["w3"], p["b3"] = _linear_init(keys[3], x_dim + y_dim, HIDDEN)
    p["w4"], p["b4"] = _linear_init(keys[4], HIDDEN, HIDDEN)
    p["wmu"], p["bmu"] = _linear_init(keys[5], HIDDEN, z_dim)
    p["wvar"], p["bvar"] = _linear_init(keys[6], HIDDEN, z_dim)
    return p


def pack_params(p, x_dim):
    """One-time repack into the fused-kernel layout: bf16 weights / f32 biases,
    W3 split along its input dim (replaces the torch concat), mu/var heads
    merged into a single [512, 2*z_dim] weight."""
    bf16 = jnp.bfloat16
    return {
        "w1": p["w1"].astype(bf16), "b1": p["b1"],
        "w2": p["w2"].astype(bf16), "b2": p["b2"],
        "wl": p["wl"].astype(bf16), "bl": p["bl"],
        "w3x": p["w3"][:x_dim].astype(bf16),
        "w3y": p["w3"][x_dim:].astype(bf16),
        "b3": p["b3"],
        "w4": p["w4"].astype(bf16), "b4": p["b4"],
        "wh": jnp.concatenate([p["wmu"], p["wvar"]], axis=1).astype(bf16),
        "bh": jnp.concatenate([p["bmu"], p["bvar"]], axis=1),
    }


def inference_net_forward(kp, x, noise_key, temperature=1.0, tm=None):
    B, x_dim = x.shape
    y_dim = kp["wl"].shape[1]
    z_dim = kp["wh"].shape[1] // 2

    # Noise in plain JAX (kept outside the kernel for bit-exact JAX RNG).
    k_g, k_n = jax.random.split(noise_key)
    eps = 1e-20
    u = jax.random.uniform(k_g, (B, y_dim), jnp.float32)
    gumbel = -jnp.log(-jnp.log(u + eps) + eps)
    normal = jax.random.normal(k_n, (B, z_dim), jnp.float32)
    noise = jnp.concatenate([gumbel, normal], axis=1)   # one packed input DMA

    # Batch tile: 256 matches v6e/v7x MXU rows (pass tm=128 on v5e).
    if tm is None:
        tm = min(256, _round_up(B, 8))
    bp = _round_up(B, tm)
    if bp != B:
        pad = ((0, bp - B), (0, 0))
        x = jnp.pad(x, pad)
        noise = jnp.pad(noise, pad)
    grid = (bp // tm,)

    def row_spec(feat):
        return pl.BlockSpec((tm, feat), lambda i: (i, 0))

    def resident_spec(arr):
        # Full-array block with constant index -> stays VMEM-resident.
        return pl.BlockSpec(arr.shape, lambda i: (0, 0))

    weights = (kp["w1"], kp["b1"], kp["w2"], kp["b2"], kp["wl"], kp["bl"],
               kp["w3x"], kp["w3y"], kp["b3"], kp["w4"], kp["b4"],
               kp["wh"], kp["bh"])
    inputs = (x, noise) + weights
    in_specs = ([row_spec(x_dim), row_spec(y_dim + z_dim)]
                + [resident_spec(a) for a in weights])
    out_dims = (y_dim, y_dim, y_dim, z_dim, z_dim, z_dim)
    out_shape = tuple(jax.ShapeDtypeStruct((bp, d), jnp.float32) for d in out_dims)
    out_specs = tuple(row_spec(d) for d in out_dims)

    flops = 2 * bp * (2 * x_dim * HIDDEN + 2 * HIDDEN * HIDDEN
                      + HIDDEN * y_dim + y_dim * HIDDEN + HIDDEN * 2 * z_dim)
    bytes_accessed = int(sum(int(a.size) * a.dtype.itemsize for a in inputs)
                         + 4 * bp * sum(out_dims))
    cost = pl.CostEstimate(flops=flops,
                           transcendentals=bp * (2 * y_dim + 2 * z_dim),
                           bytes_accessed=bytes_accessed)

    fused = pl.pallas_call(
        functools.partial(inference_kernel,
                          inv_temp=1.0 / float(temperature),
                          y_dim=y_dim, z_dim=z_dim),
        grid=grid,
        in_specs=in_specs,
        out_specs=out_specs,
        out_shape=out_shape,
        compiler_params=pltpu.CompilerParams(
            dimension_semantics=("parallel",)),
        cost_estimate=cost,
    )
    logits, prob, y, mu, var, z = fused(*inputs)
    if bp != B:
        logits, prob, y, mu, var, z = (a[:B]
                                       for a in (logits, prob, y, mu, var, z))

    return {
        "mean": mu,
        "var": var,
        "gaussian": z,
        "logits": logits,
        "prob_cat": prob,
        "categorical": y,
    }


if __name__ == "__main__":
    B, X_DIM, Z_DIM, Y_DIM = 8, 64, 32, 16

    key = jax.random.PRNGKey(0)
    k_params, k_x, k_noise = jax.random.split(key, 3)

    params = init_inference_net(k_params, X_DIM, Z_DIM, Y_DIM)
    kparams = pack_params(params, X_DIM)
    x = jax.random.normal(k_x, (B, X_DIM), jnp.float32)

    out = inference_net_forward(kparams, x, k_noise, temperature=1.0)
    out = jax.block_until_ready(out)

    assert out["mean"].shape == (B, Z_DIM)
    assert out["var"].shape == (B, Z_DIM)
    assert out["gaussian"].shape == (B, Z_DIM)
    assert out["logits"].shape == (B, Y_DIM)
    assert out["prob_cat"].shape == (B, Y_DIM)
    assert out["categorical"].shape == (B, Y_DIM)
    assert all(bool(jnp.all(jnp.isfinite(v))) for v in out.values())
    assert bool(jnp.all(out["var"] > 0.0))
    assert bool(jnp.allclose(jnp.sum(out["prob_cat"], axis=-1), 1.0, atol=1e-5))

    print("KERNEL_OK")
</pallas_src>

<mosaic_0001>
module attributes {stable_mosaic.version = 11 : i64} {
  func.func @inference_kernel(%arg0: i32, %arg1: memref<8x64xf32, #tpu.memory_space<vmem>>, %arg2: memref<8x48xf32, #tpu.memory_space<vmem>>, %arg3: memref<64x512xbf16, #tpu.memory_space<vmem>>, %arg4: memref<1x512xf32, #tpu.memory_space<vmem>>, %arg5: memref<512x512xbf16, #tpu.memory_space<vmem>>, %arg6: memref<1x512xf32, #tpu.memory_space<vmem>>, %arg7: memref<512x16xbf16, #tpu.memory_space<vmem>>, %arg8: memref<1x16xf32, #tpu.memory_space<vmem>>, %arg9: memref<64x512xbf16, #tpu.memory_space<vmem>>, %arg10: memref<16x512xbf16, #tpu.memory_space<vmem>>, %arg11: memref<1x512xf32, #tpu.memory_space<vmem>>, %arg12: memref<512x512xbf16, #tpu.memory_space<vmem>>, %arg13: memref<1x512xf32, #tpu.memory_space<vmem>>, %arg14: memref<512x64xbf16, #tpu.memory_space<vmem>>, %arg15: memref<1x64xf32, #tpu.memory_space<vmem>>, %arg16: memref<8x16xf32, #tpu.memory_space<vmem>>, %arg17: memref<8x16xf32, #tpu.memory_space<vmem>>, %arg18: memref<8x16xf32, #tpu.memory_space<vmem>>, %arg19: memref<8x32xf32, #tpu.memory_space<vmem>>, %arg20: memref<8x32xf32, #tpu.memory_space<vmem>>, %arg21: memref<8x32xf32, #tpu.memory_space<vmem>>) attributes {dimension_semantics = [#tpu.dimension_semantics<parallel>], iteration_bounds = array<i64: 1>, scalar_prefetch = 0 : i64, scratch_operands = 0 : i64, tpu.core_type = #tpu.core_type<tc>, window_params = [{transform_indices = @transform_0, window_bounds = array<i64: 8, 64>}, {transform_indices = @transform_1, window_bounds = array<i64: 8, 48>}, {pipeline_mode = #tpu.pipeline_mode<synchronous>, transform_indices = @transform_2, window_bounds = array<i64: 64, 512>}, {pipeline_mode = #tpu.pipeline_mode<synchronous>, transform_indices = @transform_3, window_bounds = array<i64: 1, 512>}, {pipeline_mode = #tpu.pipeline_mode<synchronous>, transform_indices = @transform_4, window_bounds = array<i64: 512, 512>}, {pipeline_mode = #tpu.pipeline_mode<synchronous>, transform_indices = @transform_5, window_bounds = array<i64: 1, 512>}, {pipeline_mode = #tpu.pipeline_mode<synchronous>, transform_indices = @transform_6, window_bounds = array<i64: 512, 16>}, {pipeline_mode = #tpu.pipeline_mode<synchronous>, transform_indices = @transform_7, window_bounds = array<i64: 1, 16>}, {pipeline_mode = #tpu.pipeline_mode<synchronous>, transform_indices = @transform_8, window_bounds = array<i64: 64, 512>}, {pipeline_mode = #tpu.pipeline_mode<synchronous>, transform_indices = @transform_9, window_bounds = array<i64: 16, 512>}, {pipeline_mode = #tpu.pipeline_mode<synchronous>, transform_indices = @transform_10, window_bounds = array<i64: 1, 512>}, {pipeline_mode = #tpu.pipeline_mode<synchronous>, transform_indices = @transform_11, window_bounds = array<i64: 512, 512>}, {pipeline_mode = #tpu.pipeline_mode<synchronous>, transform_indices = @transform_12, window_bounds = array<i64: 1, 512>}, {pipeline_mode = #tpu.pipeline_mode<synchronous>, transform_indices = @transform_13, window_bounds = array<i64: 512, 64>}, {pipeline_mode = #tpu.pipeline_mode<synchronous>, transform_indices = @transform_14, window_bounds = array<i64: 1, 64>}, {transform_indices = @transform_15, window_bounds = array<i64: 8, 16>}, {transform_indices = @transform_16, window_bounds = array<i64: 8, 16>}, {transform_indices = @transform_17, window_bounds = array<i64: 8, 16>}, {transform_indices = @transform_18, window_bounds = array<i64: 8, 32>}, {transform_indices = @transform_19, window_bounds = array<i64: 8, 32>}, {transform_indices = @transform_20, window_bounds = array<i64: 8, 32>}]} {
    %c0 = arith.constant 0 : index
    %c0_0 = arith.constant 0 : index
    %0 = vector.load %arg1[%c0, %c0_0] : memref<8x64xf32, #tpu.memory_space<vmem>>, vector<8x64xf32>
    %1 = arith.truncf %0 : vector<8x64xf32> to vector<8x64xbf16>
    %c0_1 = arith.constant 0 : index
    %c0_2 = arith.constant 0 : index
    %2 = vector.load %arg2[%c0_1, %c0_2] : memref<8x48xf32, #tpu.memory_space<vmem>>, vector<8x16xf32>
    %c0_3 = arith.constant 0 : index
    %c16 = arith.constant 16 : index
    %3 = vector.load %arg2[%c0_3, %c16] : memref<8x48xf32, #tpu.memory_space<vmem>>, vector<8x32xf32>
    %c0_4 = arith.constant 0 : index
    %c0_5 = arith.constant 0 : index
    %4 = vector.load %arg3[%c0_4, %c0_5] : memref<64x512xbf16, #tpu.memory_space<vmem>>, vector<64x512xbf16>
    %cst = arith.constant dense<0.000000e+00> : vector<8x512xf32>
    %5 = tpu.matmul %1, %4, %cst {dimension_numbers = #tpu.dot_dimension_numbers<[1], [0], [0], [1], [0, 0, 1, 1], [], []>} : vector<8x64xbf16>, vector<64x512xbf16>, vector<8x512xf32> -> vector<8x512xf32>
    %c0_6 = arith.constant 0 : index
    %c0_7 = arith.constant 0 : index
    %6 = vector.load %arg4[%c0_6, %c0_7] : memref<1x512xf32, #tpu.memory_space<vmem>>, vector<1x512xf32>
    %7 = vector.broadcast %6 : vector<1x512xf32> to vector<8x512xf32>
    %8 = arith.addf %5, %7 : vector<8x512xf32>
    %cst_8 = arith.constant 0.000000e+00 : f32
    %9 = vector.broadcast %cst_8 : f32 to vector<8x512xf32>
    %10 = arith.maximumf %8, %9 : vector<8x512xf32>
    %11 = arith.truncf %10 : vector<8x512xf32> to vector<8x512xbf16>
    %c0_9 = arith.constant 0 : index
    %c0_10 = arith.constant 0 : index
    %12 = vector.load %arg5[%c0_9, %c0_10] : memref<512x512xbf16, #tpu.memory_space<vmem>>, vector<512x512xbf16>
    %cst_11 = arith.constant dense<0.000000e+00> : vector<8x512xf32>
    %13 = tpu.matmul %11, %12, %cst_11 {dimension_numbers = #tpu.dot_dimension_numbers<[1], [0], [0], [1], [0, 0, 1, 1], [], []>} : vector<8x512xbf16>, vector<512x512xbf16>, vector<8x512xf32> -> vector<8x512xf32>
    %c0_12 = arith.constant 0 : index
    %c0_13 = arith.constant 0 : index
    %14 = vector.load %arg6[%c0_12, %c0_13] : memref<1x512xf32, #tpu.memory_space<vmem>>, vector<1x512xf32>
    %15 = vector.broadcast %14 : vector<1x512xf32> to vector<8x512xf32>
    %16 = arith.addf %13, %15 : vector<8x512xf32>
    %cst_14 = arith.constant 0.000000e+00 : f32
    %17 = vector.broadcast %cst_14 : f32 to vector<8x512xf32>
    %18 = arith.maximumf %16, %17 : vector<8x512xf32>
    %19 = arith.truncf %18 : vector<8x512xf32> to vector<8x512xbf16>
    %c0_15 = arith.constant 0 : index
    %c0_16 = arith.constant 0 : index
    %20 = vector.load %arg7[%c0_15, %c0_16] : memref<512x16xbf16, #tpu.memory_space<vmem>>, vector<512x16xbf16>
    %cst_17 = arith.constant dense<0.000000e+00> : vector<8x16xf32>
    %21 = tpu.matmul %19, %20, %cst_17 {dimension_numbers = #tpu.dot_dimension_numbers<[1], [0], [0], [1], [0, 0, 1, 1], [], []>} : vector<8x512xbf16>, vector<512x16xbf16>, vector<8x16xf32> -> vector<8x16xf32>
    %c0_18 = arith.constant 0 : index
    %c0_19 = arith.constant 0 : index
    %22 = vector.load %arg8[%c0_18, %c0_19] : memref<1x16xf32, #tpu.memory_space<vmem>>, vector<1x16xf32>
    %23 = vector.broadcast %22 : vector<1x16xf32> to vector<8x16xf32>
    %24 = arith.addf %21, %23 : vector<8x16xf32>
    %c0_20 = arith.constant 0 : index
    %c0_21 = arith.constant 0 : index
    %25 = vector.load %arg16[%c0_20, %c0_21] : memref<8x16xf32, #tpu.memory_space<vmem>>, vector<8x16xf32>
    tpu.vector_store %arg16[%c0_20, %c0_21], %24 {strides = array<i32>} : memref<8x16xf32, #tpu.memory_space<vmem>>, vector<8x16xf32>,
    %cst_22 = arith.constant dense<0xFF800000> : vector<8xf32>
    %26 = vector.multi_reduction <maximumf>, %24, %cst_22 [1] : vector<8x16xf32> to vector<8xf32>
    %27 = vector.shape_cast %26 : vector<8xf32> to vector<8x1xf32>
    %28 = vector.broadcast %27 : vector<8x1xf32> to vector<8x16xf32>
    %29 = arith.subf %24, %28 : vector<8x16xf32>
    %30 = math.exp %29 : vector<8x16xf32>
    %cst_23 = arith.constant dense<0.000000e+00> : vector<8xf32>
    %31 = vector.multi_reduction <add>, %30, %cst_23 [1] : vector<8x16xf32> to vector<8xf32>
    %32 = vector.shape_cast %31 : vector<8xf32> to vector<8x1xf32>
    %33 = tpu.reciprocal %32 : vector<8x1xf32> -> vector<8x1xf32>
    %34 = vector.broadcast %33 : vector<8x1xf32> to vector<8x16xf32>
    %35 = arith.mulf %30, %34 : vector<8x16xf32>
    %c0_24 = arith.constant 0 : index
    %c0_25 = arith.constant 0 : index
    %36 = vector.load %arg17[%c0_24, %c0_25] : memref<8x16xf32, #tpu.memory_space<vmem>>, vector<8x16xf32>
    tpu.vector_store %arg17[%c0_24, %c0_25], %35 {strides = array<i32>} : memref<8x16xf32, #tpu.memory_space<vmem>>, vector<8x16xf32>,
    %37 = arith.addf %24, %2 : vector<8x16xf32>
    %cst_26 = arith.constant 1.000000e+00 : f32
    %38 = vector.broadcast %cst_26 : f32 to vector<8x16xf32>
    %39 = arith.mulf %37, %38 : vector<8x16xf32>
    %cst_27 = arith.constant dense<0xFF800000> : vector<8xf32>
    %40 = vector.multi_reduction <maximumf>, %39, %cst_27 [1] : vector<8x16xf32> to vector<8xf32>
    %41 = vector.shape_cast %40 : vector<8xf32> to vector<8x1xf32>
    %42 = vector.broadcast %41 : vector<8x1xf32> to vector<8x16xf32>
    %43 = arith.subf %39, %42 : vector<8x16xf32>
    %44 = math.exp %43 : vector<8x16xf32>
    %cst_28 = arith.constant dense<0.000000e+00> : vector<8xf32>
    %45 = vector.multi_reduction <add>, %44, %cst_28 [1] : vector<8x16xf32> to vector<8xf32>
    %46 = vector.shape_cast %45 : vector<8xf32> to vector<8x1xf32>
    %47 = tpu.reciprocal %46 {approx = true} : vector<8x1xf32> -> vector<8x1xf32>
    %48 = vector.broadcast %47 : vector<8x1xf32> to vector<8x16xf32>
    %49 = arith.mulf %44, %48 : vector<8x16xf32>
    %c0_29 = arith.constant 0 : index
    %c0_30 = arith.constant 0 : index
    %50 = vector.load %arg18[%c0_29, %c0_30] : memref<8x16xf32, #tpu.memory_space<vmem>>, vector<8x16xf32>
    tpu.vector_store %arg18[%c0_29, %c0_30], %49 {strides = array<i32>} : memref<8x16xf32, #tpu.memory_space<vmem>>, vector<8x16xf32>,
    %c0_31 = arith.constant 0 : index
    %c0_32 = arith.constant 0 : index
    %51 = vector.load %arg9[%c0_31, %c0_32] : memref<64x512xbf16, #tpu.memory_space<vmem>>, vector<64x512xbf16>
    %cst_33 = arith.constant dense<0.000000e+00> : vector<8x512xf32>
    %52 = tpu.matmul %1, %51, %cst_33 {dimension_numbers = #tpu.dot_dimension_numbers<[1], [0], [0], [1], [0, 0, 1, 1], [], []>} : vector<8x64xbf16>, vector<64x512xbf16>, vector<8x512xf32> -> vector<8x512xf32>
    %53 = arith.truncf %49 : vector<8x16xf32> to vector<8x16xbf16>
    %c0_34 = arith.constant 0 : index
    %c0_35 = arith.constant 0 : index
    %54 = vector.load %arg10[%c0_34, %c0_35] : memref<16x512xbf16, #tpu.memory_space<vmem>>, vector<16x512xbf16>
    %cst_36 = arith.constant dense<0.000000e+00> : vector<8x512xf32>
    %55 = tpu.matmul %53, %54, %cst_36 {dimension_numbers = #tpu.dot_dimension_numbers<[1], [0], [0], [1], [0, 0, 1, 1], [], []>} : vector<8x16xbf16>, vector<16x512xbf16>, vector<8x512xf32> -> vector<8x512xf32>
    %56 = arith.addf %52, %55 : vector<8x512xf32>
    %c0_37 = arith.constant 0 : index
    %c0_38 = arith.constant 0 : index
    %57 = vector.load %arg11[%c0_37, %c0_38] : memref<1x512xf32, #tpu.memory_space<vmem>>, vector<1x512xf32>
    %58 = vector.broadcast %57 : vector<1x512xf32> to vector<8x512xf32>
    %59 = arith.addf %56, %58 : vector<8x512xf32>
    %cst_39 = arith.constant 0.000000e+00 : f32
    %60 = vector.broadcast %cst_39 : f32 to vector<8x512xf32>
    %61 = arith.maximumf %59, %60 : vector<8x512xf32>
    %62 = arith.truncf %61 : vector<8x512xf32> to vector<8x512xbf16>
    %c0_40 = arith.constant 0 : index
    %c0_41 = arith.constant 0 : index
    %63 = vector.load %arg12[%c0_40, %c0_41] : memref<512x512xbf16, #tpu.memory_space<vmem>>, vector<512x512xbf16>
    %cst_42 = arith.constant dense<0.000000e+00> : vector<8x512xf32>
    %64 = tpu.matmul %62, %63, %cst_42 {dimension_numbers = #tpu.dot_dimension_numbers<[1], [0], [0], [1], [0, 0, 1, 1], [], []>} : vector<8x512xbf16>, vector<512x512xbf16>, vector<8x512xf32> -> vector<8x512xf32>
    %c0_43 = arith.constant 0 : index
    %c0_44 = arith.constant 0 : index
    %65 = vector.load %arg13[%c0_43, %c0_44] : memref<1x512xf32, #tpu.memory_space<vmem>>, vector<1x512xf32>
    %66 = vector.broadcast %65 : vector<1x512xf32> to vector<8x512xf32>
    %67 = arith.addf %64, %66 : vector<8x512xf32>
    %cst_45 = arith.constant 0.000000e+00 : f32
    %68 = vector.broadcast %cst_45 : f32 to vector<8x512xf32>
    %69 = arith.maximumf %67, %68 : vector<8x512xf32>
    %70 = arith.truncf %69 : vector<8x512xf32> to vector<8x512xbf16>
    %c0_46 = arith.constant 0 : index
    %c0_47 = arith.constant 0 : index
    %71 = vector.load %arg14[%c0_46, %c0_47] : memref<512x64xbf16, #tpu.memory_space<vmem>>, vector<512x64xbf16>
    %cst_48 = arith.constant dense<0.000000e+00> : vector<8x64xf32>
    %72 = tpu.matmul %70, %71, %cst_48 {dimension_numbers = #tpu.dot_dimension_numbers<[1], [0], [0], [1], [0, 0, 1, 1], [], []>} : vector<8x512xbf16>, vector<512x64xbf16>, vector<8x64xf32> -> vector<8x64xf32>
    %c0_49 = arith.constant 0 : index
    %c0_50 = arith.constant 0 : index
    %73 = vector.load %arg15[%c0_49, %c0_50] : memref<1x64xf32, #tpu.memory_space<vmem>>, vector<1x64xf32>
    %74 = vector.broadcast %73 : vector<1x64xf32> to vector<8x64xf32>
    %75 = arith.addf %72, %74 : vector<8x64xf32>
    %76 = vector.extract_strided_slice %75 {offsets = [0, 0], sizes = [8, 32], strides = [1, 1]} : vector<8x64xf32> to vector<8x32xf32>
    %77 = vector.extract_strided_slice %75 {offsets = [0, 32], sizes = [8, 32], strides = [1, 1]} : vector<8x64xf32> to vector<8x32xf32>
    %cst_51 = arith.constant 0.000000e+00 : f32
    %78 = vector.broadcast %cst_51 : f32 to vector<8x32xf32>
    %79 = arith.maximumf %77, %78 : vector<8x32xf32>
    %80 = math.absf %77 : vector<8x32xf32>
    %cst_52 = arith.constant 0.000000e+00 : f32
    %81 = vector.broadcast %cst_52 : f32 to vector<8x32xf32>
    %82 = arith.subf %81, %80 : vector<8x32xf32>
    %83 = math.exp %82 : vector<8x32xf32>
    %84 = math.log1p %83 : vector<8x32xf32>
    %85 = arith.addf %79, %84 : vector<8x32xf32>
    %c0_53 = arith.constant 0 : index
    %c0_54 = arith.constant 0 : index
    %86 = vector.load %arg19[%c0_53, %c0_54] : memref<8x32xf32, #tpu.memory_space<vmem>>, vector<8x32xf32>
    tpu.vector_store %arg19[%c0_53, %c0_54], %76 {strides = array<i32>} : memref<8x32xf32, #tpu.memory_space<vmem>>, vector<8x32xf32>,
    %c0_55 = arith.constant 0 : index
    %c0_56 = arith.constant 0 : index
    %87 = vector.load %arg20[%c0_55, %c0_56] : memref<8x32xf32, #tpu.memory_space<vmem>>, vector<8x32xf32>
    tpu.vector_store %arg20[%c0_55, %c0_56], %85 {strides = array<i32>} : memref<8x32xf32, #tpu.memory_space<vmem>>, vector<8x32xf32>,
    %cst_57 = arith.constant 1.000000e-10 : f32
    %88 = vector.broadcast %cst_57 : f32 to vector<8x32xf32>
    %89 = arith.addf %85, %88 : vector<8x32xf32>
    %90 = math.sqrt %89 : vector<8x32xf32>
    %91 = arith.mulf %3, %90 : vector<8x32xf32>
    %92 = arith.addf %76, %91 : vector<8x32xf32>
    %c0_58 = arith.constant 0 : index
    %c0_59 = arith.constant 0 : index
    %93 = vector.load %arg21[%c0_58, %c0_59] : memref<8x32xf32, #tpu.memory_space<vmem>>, vector<8x32xf32>
    tpu.vector_store %arg21[%c0_58, %c0_59], %92 {strides = array<i32>} : memref<8x32xf32, #tpu.memory_space<vmem>>, vector<8x32xf32>,
    return
  }
  func.func @transform_0(%arg0: i32) -> (i32, i32) {
    %c0_i32 = arith.constant 0 : i32
    %c0_i32_0 = arith.constant 0 : i32
    return %arg0, %c0_i32 : i32, i32
  }
  func.func @transform_1(%arg0: i32) -> (i32, i32) {
    %c0_i32 = arith.constant 0 : i32
    %c0_i32_0 = arith.constant 0 : i32
    return %arg0, %c0_i32 : i32, i32
  }
  func.func @transform_2(%arg0: i32) -> (i32, i32) {
    %c0_i32 = arith.constant 0 : i32
    %c0_i32_0 = arith.constant 0 : i32
    %c0_i32_1 = arith.constant 0 : i32
    return %c0_i32, %c0_i32_0 : i32, i32
  }
  func.func @transform_3(%arg0: i32) -> (i32, i32) {
    %c0_i32 = arith.constant 0 : i32
    %c0_i32_0 = arith.constant 0 : i32
    %c0_i32_1 = arith.constant 0 : i32
    return %c0_i32, %c0_i32_0 : i32, i32
  }
  func.func @transform_4(%arg0: i32) -> (i32, i32) {
    %c0_i32 = arith.constant 0 : i32
    %c0_i32_0 = arith.constant 0 : i32
    %c0_i32_1 = arith.constant 0 : i32
    return %c0_i32, %c0_i32_0 : i32, i32
  }
  func.func @transform_5(%arg0: i32) -> (i32, i32) {
    %c0_i32 = arith.constant 0 : i32
    %c0_i32_0 = arith.constant 0 : i32
    %c0_i32_1 = arith.constant 0 : i32
    return %c0_i32, %c0_i32_0 : i32, i32
  }
  func.func @transform_6(%arg0: i32) -> (i32, i32) {
    %c0_i32 = arith.constant 0 : i32
    %c0_i32_0 = arith.constant 0 : i32
    %c0_i32_1 = arith.constant 0 : i32
    return %c0_i32, %c0_i32_0 : i32, i32
  }
  func.func @transform_7(%arg0: i32) -> (i32, i32) {
    %c0_i32 = arith.constant 0 : i32
    %c0_i32_0 = arith.constant 0 : i32
    %c0_i32_1 = arith.constant 0 : i32
    return %c0_i32, %c0_i32_0 : i32, i32
  }
  func.func @transform_8(%arg0: i32) -> (i32, i32) {
    %c0_i32 = arith.constant 0 : i32
    %c0_i32_0 = arith.constant 0 : i32
    %c0_i32_1 = arith.constant 0 : i32
    return %c0_i32, %c0_i32_0 : i32, i32
  }
  func.func @transform_9(%arg0: i32) -> (i32, i32) {
    %c0_i32 = arith.constant 0 : i32
    %c0_i32_0 = arith.constant 0 : i32
    %c0_i32_1 = arith.constant 0 : i32
    return %c0_i32, %c0_i32_0 : i32, i32
  }
  func.func @transform_10(%arg0: i32) -> (i32, i32) {
    %c0_i32 = arith.constant 0 : i32
    %c0_i32_0 = arith.constant 0 : i32
    %c0_i32_1 = arith.constant 0 : i32
    return %c0_i32, %c0_i32_0 : i32, i32
  }
  func.func @transform_11(%arg0: i32) -> (i32, i32) {
    %c0_i32 = arith.constant 0 : i32
    %c0_i32_0 = arith.constant 0 : i32
    %c0_i32_1 = arith.constant 0 : i32
    return %c0_i32, %c0_i32_0 : i32, i32
  }
  func.func @transform_12(%arg0: i32) -> (i32, i32) {
    %c0_i32 = arith.constant 0 : i32
    %c0_i32_0 = arith.constant 0 : i32
    %c0_i32_1 = arith.constant 0 : i32
    return %c0_i32, %c0_i32_0 : i32, i32
  }
  func.func @transform_13(%arg0: i32) -> (i32, i32) {
    %c0_i32 = arith.constant 0 : i32
    %c0_i32_0 = arith.constant 0 : i32
    %c0_i32_1 = arith.constant 0 : i32
    return %c0_i32, %c0_i32_0 : i32, i32
  }
  func.func @transform_14(%arg0: i32) -> (i32, i32) {
    %c0_i32 = arith.constant 0 : i32
    %c0_i32_0 = arith.constant 0 : i32
    %c0_i32_1 = arith.constant 0 : i32
    return %c0_i32, %c0_i32_0 : i32, i32
  }
  func.func @transform_15(%arg0: i32) -> (i32, i32) {
    %c0_i32 = arith.constant 0 : i32
    %c0_i32_0 = arith.constant 0 : i32
    return %arg0, %c0_i32 : i32, i32
  }
  func.func @transform_16(%arg0: i32) -> (i32, i32) {
    %c0_i32 = arith.constant 0 : i32
    %c0_i32_0 = arith.constant 0 : i32
    return %arg0, %c0_i32 : i32, i32
  }
  func.func @transform_17(%arg0: i32) -> (i32, i32) {
    %c0_i32 = arith.constant 0 : i32
    %c0_i32_0 = arith.constant 0 : i32
    return %arg0, %c0_i32 : i32, i32
  }
  func.func @transform_18(%arg0: i32) -> (i32, i32) {
    %c0_i32 = arith.constant 0 : i32
    %c0_i32_0 = arith.constant 0 : i32
    return %arg0, %c0_i32 : i32, i32
  }
  func.func @transform_19(%arg0: i32) -> (i32, i32) {
    %c0_i32 = arith.constant 0 : i32
    %c0_i32_0 = arith.constant 0 : i32
    return %arg0, %c0_i32 : i32, i32
  }
  func.func @transform_20(%arg0: i32) -> (i32, i32) {
    %c0_i32 = arith.constant 0 : i32
    %c0_i32_0 = arith.constant 0 : i32
    return %arg0, %c0_i32 : i32, i32
  }
}

</mosaic_0001>

<bundles_post_ra>
// kernel: tpu_custom_call.1
= control target key start
LH: loop header
LB: loop body
LE: loop exit
PB: predicated region body
PF: predicated region fallthrough
CT: control target
= control target key end

     0   :  { %s5201_s0 = inlined_call_operand.vmem [shape: f32[8,64], index: 0, kind: input, shape index: {}]   ;;  %s5202_s1 = inlined_call_operand.vmem [shape: f32[8,48], index: 1, kind: input, shape index: {}]   ;;  %s5203_s2 = inlined_call_operand.vmem [shape: bf16[64,512], index: 2, kind: input, shape index: {}]   ;;  %s5204_s3 = inlined_call_operand.vmem [shape: f32[1,512], index: 3, kind: input, shape index: {}]   ;;  %s5205_s4 = inlined_call_operand.hbm [shape: bf16[512,512], index: 4, kind: input, shape index: {}]   ;;  %s5206_s5 = inlined_call_operand.vmem [shape: f32[1,512], index: 5, kind: input, shape index: {}]   ;;  %s5207_s6 = inlined_call_operand.vmem [shape: bf16[512,16], index: 6, kind: input, shape index: {}]   ;;  %s5208_s7 = inlined_call_operand.vmem [shape: f32[1,16], index: 7, kind: input, shape index: {}]   ;;  %s5209_s8 = inlined_call_operand.vmem [shape: bf16[64,512], index: 8, kind: input, shape index: {}]   ;;  %s5210_s9 = inlined_call_operand.vmem [shape: bf16[16,512], index: 9, kind: input, shape index: {}]   ;;  %s5211_s10 = inlined_call_operand.vmem [shape: f32[1,512], index: 10, kind: input, shape index: {}]   ;;  %s5212_s11 = inlined_call_operand.hbm [shape: bf16[512,512], index: 11, kind: input, shape index: {}]   ;;  %s5213_s12 = inlined_call_operand.vmem [shape: f32[1,512], index: 12, kind: input, shape index: {}]   ;;  %s5214_s13 = inlined_call_operand.vmem [shape: bf16[512,64], index: 13, kind: input, shape index: {}]   ;;  %s5215_s14 = inlined_call_operand.vmem [shape: f32[1,64], index: 14, kind: input, shape index: {}]   ;;  %s5216_s15 = inlined_call_operand.hbm [shape: f32[8,16], index: 15, kind: output, shape index: {0}]   ;;  %s5217_s16 = inlined_call_operand.hbm [shape: f32[8,16], index: 16, kind: output, shape index: {1}]   ;;  %s5218_s17 = inlined_call_operand.hbm [shape: f32[8,16], index: 17, kind: output, shape index: {2}]   ;;  %s5219_s18 = inlined_call_operand.hbm [shape: f32[8,32], index: 18, kind: output, shape index: {3}]   ;;  %s5220_s19 = inlined_call_operand.hbm [shape: f32[8,32], index: 19, kind: output, shape index: {4}]   ;;  %s5221_s20 = inlined_call_operand.hbm [shape: f32[8,32], index: 20, kind: output, shape index: {5}]  }
   0x1   :  { %5226 = sst [smem:[#allocation22_spill]] %s5201_s0 }
   0x2   :  { %5227 = sst [smem:[#allocation23_spill]] %s5202_s1 }
   0x3   :  { %5228 = sst [smem:[#allocation24_spill]] %s5203_s2 }
   0x4   :  { %5229 = sst [smem:[#allocation25_spill]] %s5204_s3 }
   0x5   :  { %5230 = sst [smem:[#allocation26_spill]] %s5205_s4 }
   0x6   :  { %5231 = sst [smem:[#allocation27_spill]] %s5221_s20 }
   0x7   :  { %26 = vsyncpa [#allocation3], 0 }
   0x8   :  { %27 = vsyncpa [#allocation6], 0 }
   0x9   :  { %28 = vsyncpa [#allocation4], 0 }
   0xa   :  { %29 = vsyncpa [#allocation9], 0 }
   0xb   :  { %30 = vsyncpa [#allocation12], 0 }
   0xc   :  { %31 = vsyncpa [#allocation15], 0  ;;  %s4582_s1 = smov [#allocation2]   ;;  %s5232_s2 = sld [smem:[#allocation26_spill]] }
   0xd   :  { %s45_s22 = sshll.u32 %s4582_s1, 4  ;;  %s46_s22 = int_to_ptr.vmem [resolvable:$true] %s45_s22 }
  0x12   :  { %s4394_s25 = scalar_lea.hbm %s5232_s2, 16384 }
  0x13   :  { %p4395_p0 = scmp.ne.s32.totalorder %s5232_s2, %s4394_s25  ;;  %p4398_p1 = scmp.lt.u32.totalorder %s4394_s25, %s5232_s2 }
  0x15   :  { %p4400_p2 = pnand %p4398_p1, %p4395_p0 }
  0x17   :  { %4403 = shalt.err (!%p4400_p2)
}
  0x18   :  { %s4404_s4 = scalar_lea.vmem %s46_s22, 16384  ;;  %p4409_p4 = scmp.lt.s32.totalorder %s46_s22, %s46_s22 }
  0x19   :  { %p4405_p3 = scmp.ne.s32.totalorder %s46_s22, %s4404_s4  ;;  %p4410_p5 = scmp.lt.s32.totalorder %s4404_s4, %s4404_s4 }
  0x1b   :  { %p4411_p6 = por %p4410_p5, %p4409_p4 }
  0x1d   :  { %p4412_p7 = pnand %p4411_p6, %p4405_p3 }
  0x1f   :  { %4415 = shalt.err (!%p4412_p7)
}
  0x20   :  { %s4583_s29 = smov 256   ;;  %s4584_s30 = smov 16  }
  0x21   :  { %51 = dma.hbm_to_vmem [thread:$0]  %s5232_s2, 16384, %s46_s22, [#allocation3], %s4583_s29, %s4583_s29, %s4584_s30  }
  0x22   :  { %s4585_s1 = smov [#allocation5]   ;;  %s4416_s3 = scalar_lea.hbm %s5212_s11, 16384 }
  0x23   :  { %s69_s23 = sshll.u32 %s4585_s1, 4  ;;  %p4417_p8 = scmp.ne.s32.totalorder %s5212_s11, %s4416_s3  ;;  %s70_s23 = int_to_ptr.vmem [resolvable:$true] %s69_s23 }
  0x24   :  { %p4420_p9 = scmp.lt.u32.totalorder %s4416_s3, %s5212_s11 }
  0x26   :  { %p4422_p10 = pnand %p4420_p9, %p4417_p8 }
  0x28   :  { %4425 = shalt.err (!%p4422_p10)
}
  0x29   :  { %s4426_s20 = scalar_lea.vmem %s70_s23, 16384  ;;  %p4431_p12 = scmp.lt.s32.totalorder %s70_s23, %s70_s23 }
  0x2a   :  { %p4427_p11 = scmp.ne.s32.totalorder %s70_s23, %s4426_s20  ;;  %p4432_p13 = scmp.lt.s32.totalorder %s4426_s20, %s4426_s20 }
  0x2c   :  { %p4433_p0 = por %p4432_p13, %p4431_p12 }
  0x2e   :  { %p4434_p1 = pnand %p4433_p0, %p4427_p11 }
  0x30   :  { %4437 = shalt.err (!%p4434_p1)
}
  0x31   :  { %75 = dma.hbm_to_vmem [thread:$0]  %s5212_s11, 16384, %s70_s23, [#allocation6], %s4583_s29, %s4583_s29, %s4584_s30  }
  0x32   :  { %4570 = dma.done.wait [#allocation3], 16384  }
  0x33   :  { %4571 = vsyncadd [#allocation3], 4294950912 }
  0x34   :  { %4572 = dma.done.wait [#allocation6], 16384  }
  0x35   :  { %4573 = vsyncadd [#allocation6], 4294950912  ;;  %v4586_v0 = vmov 0   ;;  %s5233_s1 = sld [smem:[#allocation24_spill]]  ;;  %s5234_s28 = sld [smem:[#allocation22_spill]]  ;;  %vm210_vm0 = vcmask 523264  }
  0x36   :  { %246 = vmatprep.mubr.bf16.mxu0 %v4586_v0  ;;  %287 = vmatprep.mubr.bf16.mxu1 %v4586_v0  ;;  %v3903_v15 = vld [vmem:[#allocation2 + $0x4] ss:$16 sps:$4 sm:$0xff]   ;;  %v3901_v19 = vld [vmem:[#allocation2] ss:$16 sps:$4 sm:$0xff]   ;;  %v3906_v22 = vld [vmem:[#allocation2 + $0xc] ss:$16 sps:$4 sm:$0xff]  }
  0x37   :  { %v3909_v20 = vld [vmem:[#allocation2 + $0x24] ss:$16 sps:$4 sm:$0xff]   ;;  %v3907_v23 = vld [vmem:[#allocation2 + $0x20] ss:$16 sps:$4 sm:$0xff]   ;;  %v3904_v25 = vld [vmem:[#allocation2 + $0x8] ss:$16 sps:$4 sm:$0xff]  }
  0x38   :  { %v3915_v24 = vld [vmem:[#allocation2 + $0x44] ss:$16 sps:$4 sm:$0xff]   ;;  %v3912_v26 = vld [vmem:[#allocation2 + $0x2c] ss:$16 sps:$4 sm:$0xff]   ;;  %v3913_v27 = vld [vmem:[#allocation2 + $0x40] ss:$16 sps:$4 sm:$0xff]  }
  0x39   :  { %v3921_v28 = vld [vmem:[#allocation2 + $0x64] ss:$16 sps:$4 sm:$0xff]   ;;  %v3910_v29 = vld [vmem:[#allocation2 + $0x28] ss:$16 sps:$4 sm:$0xff]   ;;  %v3918_v30 = vld [vmem:[#allocation2 + $0x4c] ss:$16 sps:$4 sm:$0xff]  }
  0x3a   :  { %v3919_v31 = vld [vmem:[#allocation2 + $0x60] ss:$16 sps:$4 sm:$0xff]   ;;  %v3927_v32 = vld [vmem:[#allocation2 + $0x84] ss:$16 sps:$4 sm:$0xff]   ;;  %v3916_v33 = vld [vmem:[#allocation2 + $0x48] ss:$16 sps:$4 sm:$0xff]  }
  0x3b   :  { %v3877_v1 = vld [vmem:[%s5233_s1 + $0x4] ss:$16 sps:$4 sm:$0xff]   ;;  %v3879_v2 = vld [vmem:[%s5233_s1] ss:$16 sps:$4 sm:$0xff]   ;;  %v3889_v7 = vld [vmem:[%s5233_s1 + $0xc] ss:$16 sps:$4 sm:$0xff]  }
  0x3c   :  { %214 = vmatprep.subr.bf16.mxu0 %v3877_v1  ;;  %v3880_v3 = vld [vmem:[%s5233_s1 + $0x24] ss:$16 sps:$4 sm:$0xff]   ;;  %v3882_v4 = vld [vmem:[%s5233_s1 + $0x20] ss:$16 sps:$4 sm:$0xff]   ;;  %v3891_v8 = vld [vmem:[%s5233_s1 + $0x8] ss:$16 sps:$4 sm:$0xff]   ;;  %255 = vmatprep.subr.bf16.mxu1 %v3889_v7 }
  0x3d   :  { %215 = vmatpush1.bf16.msra.mxu0 %v3879_v2  ;;  %v3883_v5 = vld [vmem:[%s5233_s1 + $0x44] ss:$16 sps:$4 sm:$0xff]   ;;  %v3885_v6 = vld [vmem:[%s5233_s1 + $0x40] ss:$16 sps:$4 sm:$0xff]   ;;  %v3892_v9 = vld [vmem:[%s5233_s1 + $0x2c] ss:$16 sps:$4 sm:$0xff]   ;;  %256 = vmatpush1.bf16.msra.mxu1 %v3891_v8 }
  0x3e   :  { %216 = vmatprep.subr.bf16.mxu0 %v3880_v3  ;;  %v3886_v10 = vld [vmem:[%s5233_s1 + $0x64] ss:$16 sps:$4 sm:$0xff]   ;;  %v3894_v11 = vld [vmem:[%s5233_s1 + $0x28] ss:$16 sps:$4 sm:$0xff]   ;;  %v3888_v12 = vld [vmem:[%s5233_s1 + $0x60] ss:$16 sps:$4 sm:$0xff]   ;;  %257 = vmatprep.subr.bf16.mxu1 %v3892_v9 }
  0x3f   :  { %v3895_v13 = vld [vmem:[%s5233_s1 + $0x4c] ss:$16 sps:$4 sm:$0xff]   ;;  %v89_v14 = vld [vmem:[%s5234_s28] sm:$0xff]  ;;  %v3897_v16 = vld [vmem:[%s5233_s1 + $0x48] ss:$16 sps:$4 sm:$0xff]   ;;  %s5235_s25 = sld [smem:[#allocation25_spill]] }
  0x40   :  { %v4771_v17 = vpack.c.bf16 %v89_v14, %v89_v14  ;;  %v3898_v18 = vld [vmem:[%s5233_s1 + $0x6c] ss:$16 sps:$4 sm:$0xff]   ;;  %v3900_v21 = vld [vmem:[%s5233_s1 + $0x68] ss:$16 sps:$4 sm:$0xff]   ;;  %v3925_v35 = vld [vmem:[#allocation2 + $0x80] ss:$16 sps:$4 sm:$0xff]  }
  0x41   :  { %217 = vmatpush1.bf16.msra.mxu0 %v3882_v4  ;;  %258 = vmatpush1.bf16.msra.mxu1 %v3894_v11  ;;  %v3924_v34 = vld [vmem:[#allocation2 + $0x6c] ss:$16 sps:$4 sm:$0xff]   ;;  %v3933_v36 = vld [vmem:[#allocation2 + $0xa4] ss:$16 sps:$4 sm:$0xff]   ;;  %v3922_v37 = vld [vmem:[#allocation2 + $0x68] ss:$16 sps:$4 sm:$0xff]  }
  0x42   :  { %218 = vmatprep.subr.bf16.mxu0 %v3883_v5  ;;  %259 = vmatprep.subr.bf16.mxu1 %v3895_v13  ;;  %v3930_v38 = vld [vmem:[#allocation2 + $0x8c] ss:$16 sps:$4 sm:$0xff]   ;;  %v3931_v39 = vld [vmem:[#allocation2 + $0xa0] ss:$16 sps:$4 sm:$0xff]   ;;  %v3939_v40 = vld [vmem:[#allocation2 + $0xc4] ss:$16 sps:$4 sm:$0xff]  }
  0x43   :  { %v3928_v41 = vld [vmem:[#allocation2 + $0x88] ss:$16 sps:$4 sm:$0xff]   ;;  %v3936_v42 = vld [vmem:[#allocation2 + $0xac] ss:$16 sps:$4 sm:$0xff]   ;;  %v3937_v43 = vld [vmem:[#allocation2 + $0xc0] ss:$16 sps:$4 sm:$0xff]  }
  0x44   :  { %v3945_v44 = vld [vmem:[#allocation2 + $0xe4] ss:$16 sps:$4 sm:$0xff]   ;;  %v3934_v45 = vld [vmem:[#allocation2 + $0xa8] ss:$16 sps:$4 sm:$0xff]   ;;  %v3942_v46 = vld [vmem:[#allocation2 + $0xcc] ss:$16 sps:$4 sm:$0xff]  }
  0x45   :  { %219 = vmatpush1.bf16.msra.mxu0 %v3885_v6  ;;  %260 = vmatpush1.bf16.msra.mxu1 %v3897_v16  ;;  %v3943_v47 = vld [vmem:[#allocation2 + $0xe0] ss:$16 sps:$4 sm:$0xff]   ;;  %v3951_v48 = vld [vmem:[#allocation2 + $0x104] ss:$16 sps:$4 sm:$0xff]   ;;  %v3940_v49 = vld [vmem:[#allocation2 + $0xc8] ss:$16 sps:$4 sm:$0xff]  }
  0x46   :  { %220 = vmatprep.subr.bf16.mxu0 %v3886_v10  ;;  %261 = vmatprep.subr.bf16.mxu1 %v3898_v18  ;;  %v3948_v50 = vld [vmem:[#allocation2 + $0xec] ss:$16 sps:$4 sm:$0xff]   ;;  %v3946_v51 = vld [vmem:[#allocation2 + $0xe8] ss:$16 sps:$4 sm:$0xff]   ;;  %v3949_v52 = vld [vmem:[#allocation2 + $0x100] ss:$16 sps:$4 sm:$0xff]  }
  0x47   :  { %v3954_v53 = vld [vmem:[#allocation2 + $0x10c] ss:$16 sps:$4 sm:$0xff]   ;;  %v3957_v54 = vld [vmem:[#allocation2 + $0x124] ss:$16 sps:$4 sm:$0xff]   ;;  %v3955_v55 = vld [vmem:[#allocation2 + $0x120] ss:$16 sps:$4 sm:$0xff]  }
  0x48   :  { %v3963_v56 = vld [vmem:[#allocation2 + $0x144] ss:$16 sps:$4 sm:$0xff]   ;;  %v3952_v57 = vld [vmem:[#allocation2 + $0x108] ss:$16 sps:$4 sm:$0xff]   ;;  %v3960_v58 = vld [vmem:[#allocation2 + $0x12c] ss:$16 sps:$4 sm:$0xff]  }
  0x49   :  { %221 = vmatpush1.bf16.msra.mxu0 %v3888_v12  ;;  %262 = vmatpush1.bf16.msra.mxu1 %v3900_v21  ;;  %v3961_v59 = vld [vmem:[#allocation2 + $0x140] ss:$16 sps:$4 sm:$0xff]   ;;  %v3969_v60 = vld [vmem:[#allocation2 + $0x164] ss:$16 sps:$4 sm:$0xff]   ;;  %v3958_v61 = vld [vmem:[#allocation2 + $0x128] ss:$16 sps:$4 sm:$0xff]  }
  0x4a   :  { %1094 = vmatprep.subr.bf16.mxu0 %v3903_v15  ;;  %1176 = vmatprep.subr.bf16.mxu1 %v3906_v22  ;;  %v3966_v62 = vld [vmem:[#allocation2 + $0x14c] ss:$16 sps:$4 sm:$0xff]   ;;  %v3967_v63 = vld [vmem:[#allocation2 + $0x160] ss:$16 sps:$4 sm:$0xff]   ;;  %v3975_v1 = vld [vmem:[#allocation2 + $0x184] ss:$16 sps:$4 sm:$0xff]  }
  0x4b   :  { %v3964_v2 = vld [vmem:[#allocation2 + $0x148] ss:$16 sps:$4 sm:$0xff]   ;;  %v3972_v3 = vld [vmem:[#allocation2 + $0x16c] ss:$16 sps:$4 sm:$0xff]   ;;  %v3973_v4 = vld [vmem:[#allocation2 + $0x180] ss:$16 sps:$4 sm:$0xff]  }
  0x4c   :  { %3404 = vmatmul.mubr.msk.bf16.vlgmr.msra.gmra.mrb[0].mxu0 %vm210_vm0, %v4771_v17  ;;  %3405 = vmatmul.mubr.msk.bf16.vlgmr.msra.gmra.mrb[0].mxu1 %vm210_vm0, %v4771_v17  ;;  %v3981_v5 = vld [vmem:[#allocation2 + $0x1a4] ss:$16 sps:$4 sm:$0xff]   ;;  %v3970_v6 = vld [vmem:[#allocation2 + $0x168] ss:$16 sps:$4 sm:$0xff]   ;;  %v3978_v7 = vld [vmem:[#allocation2 + $0x18c] ss:$16 sps:$4 sm:$0xff]  }
  0x4d   :  { %1095 = vmatpush1.bf16.msra.mxu0 %v3901_v19  ;;  %1177 = vmatpush1.bf16.msra.mxu1 %v3904_v25  ;;  %v3979_v8 = vld [vmem:[#allocation2 + $0x1a0] ss:$16 sps:$4 sm:$0xff]   ;;  %v3976_v9 = vld [vmem:[#allocation2 + $0x188] ss:$16 sps:$4 sm:$0xff]   ;;  %v3984_v10 = vld [vmem:[#allocation2 + $0x1ac] ss:$16 sps:$4 sm:$0xff]  }
  0x4e   :  { %1096 = vmatprep.subr.bf16.mxu0 %v3909_v20  ;;  %1178 = vmatprep.subr.bf16.mxu1 %v3912_v26  ;;  %v3982_v11 = vld [vmem:[#allocation2 + $0x1a8] ss:$16 sps:$4 sm:$0xff]   ;;  %v3987_v12 = vld [vmem:[#allocation2 + $0x1c4] ss:$16 sps:$4 sm:$0xff]   ;;  %v3990_v13 = vld [vmem:[#allocation2 + $0x1cc] ss:$16 sps:$4 sm:$0xff]  }
  0x4f   :  { %v3985_v14 = vld [vmem:[#allocation2 + $0x1c0] ss:$16 sps:$4 sm:$0xff]   ;;  %v3988_v15 = vld [vmem:[#allocation2 + $0x1c8] ss:$16 sps:$4 sm:$0xff]   ;;  %v3993_v16 = vld [vmem:[#allocation2 + $0x1e4] ss:$16 sps:$4 sm:$0xff]  }
  0x50   :  { %v3996_v18 = vld [vmem:[#allocation2 + $0x1ec] ss:$16 sps:$4 sm:$0xff]   ;;  %v3991_v19 = vld [vmem:[#allocation2 + $0x1e0] ss:$16 sps:$4 sm:$0xff]   ;;  %v3994_v20 = vld [vmem:[#allocation2 + $0x1e8] ss:$16 sps:$4 sm:$0xff]  }
  0x51   :  { %1097 = vmatpush1.bf16.msra.mxu0 %v3907_v23  ;;  %1179 = vmatpush1.bf16.msra.mxu1 %v3910_v29  ;;  %v3999_v21 = vld [vmem:[#allocation2 + $0x204] ss:$16 sps:$4 sm:$0xff]   ;;  %v4002_v22 = vld [vmem:[#allocation2 + $0x20c] ss:$16 sps:$4 sm:$0xff]   ;;  %v110_v23 = vlaneseq  ;;  %v4791_v26 = vld [vmem:[%s5235_s25] sm:$0xf] }
  0x52   :  { %1098 = vmatprep.subr.bf16.mxu0 %v3915_v24  ;;  %1180 = vmatprep.subr.bf16.mxu1 %v3918_v30  ;;  %vm1609_vm1 = vcmask 130048   ;;  %s5236_s11 = sld [smem:[#allocation23_spill]]  ;;  %vm3278_vm2 = vcmask 261120   ;;  %s4589_s29 = smov [#allocation8]  }
  0x53   :  { %v4783_v24 = vshrl.u32 %v110_v23, 7  ;;  %v4051_v23 = vld [vmem:[#allocation2 + $0x320] ss:$16 sps:$4 sm:$0xff]   ;;  %s3320_s30 = sshll.u32 %s4589_s29, 4  ;;  %s4590_s23 = smov [#allocation11]   ;;  %s3321_s30 = int_to_ptr.vmem [resolvable:$true] %s3320_s30 }
  0x54   :  { %s3340_s3 = sshll.u32 %s4590_s23, 4  ;;  %s4438_s26 = scalar_lea.vmem %s3321_s30, 128  ;;  %s3341_s3 = int_to_ptr.vmem [resolvable:$true] %s3340_s3 }
  0x55   :  { %1099 = vmatpush1.bf16.msra.mxu0 %v3913_v27  ;;  %1181 = vmatpush1.bf16.msra.mxu1 %v3916_v33  ;;  %v4786_v25 = vsub.s32 0, %v4783_v24  ;;  %v4794_v27 = vsub.s32 1, %v4783_v24  ;;  %p4439_p2 = scmp.ne.s32.totalorder %s3321_s30, %s4438_s26  ;;  %p4443_p3 = scmp.lt.s32.totalorder %s3321_s30, %s3321_s30 }
  0x56   :  { %1100 = vmatprep.subr.bf16.mxu0 %v3921_v28  ;;  %1182 = vmatprep.subr.bf16.mxu1 %v3924_v34  ;;  %p4444_p4 = scmp.lt.s32.totalorder %s4438_s26, %s4438_s26 }
  0x57   :  { %v113_v28 = vrot.slane %v4791_v26, %v4786_v25  ;;  %v117_v29 = vrot.slane %v4791_v26, %v4794_v27 }
  0x58   :  { %p4445_p5 = por %p4444_p4, %p4443_p3 }
  0x59   :  { %1101 = vmatpush1.bf16.msra.mxu0 %v3919_v31  ;;  %1183 = vmatpush1.bf16.msra.mxu1 %v3922_v37  ;;  %v4801_v31 = vsub.s32 3, %v4783_v24 }
  0x5a   :  { %1102 = vmatprep.subr.bf16.mxu0 %v3927_v32  ;;  %1184 = vmatprep.subr.bf16.mxu1 %v3930_v38  ;;  %p4446_p6 = pnand %p4445_p5, %p4439_p2 }
  0x5d   :  { %1103 = vmatpush1.bf16.msra.mxu0 %v3925_v35  ;;  %1185 = vmatpush1.bf16.msra.mxu1 %v3928_v41  ;;  %v3997_v41 = vld [vmem:[#allocation2 + $0x200] ss:$16 sps:$4 sm:$0xff]  }
  0x5e   :  { %1104 = vmatprep.subr.bf16.mxu0 %v3933_v36  ;;  %1186 = vmatprep.subr.bf16.mxu1 %v3936_v42  ;;  %v4000_v42 = vld [vmem:[#allocation2 + $0x208] ss:$16 sps:$4 sm:$0xff]  }
  0x61   :  { %1105 = vmatpush1.bf16.msra.mxu0 %v3931_v39  ;;  %1187 = vmatpush1.bf16.msra.mxu1 %v3934_v45  ;;  %v125_v39 = vrot.slane %v4791_v26, %v4801_v31  ;;  %v4005_v45 = vld [vmem:[#allocation2 + $0x224] ss:$16 sps:$4 sm:$0xff]  }
  0x62   :  { %1106 = vmatprep.subr.bf16.mxu0 %v3939_v40  ;;  %1188 = vmatprep.subr.bf16.mxu1 %v3942_v46  ;;  %v4008_v46 = vld [vmem:[#allocation2 + $0x22c] ss:$16 sps:$4 sm:$0xff]  }
  0x65   :  { %1107 = vmatpush1.bf16.msra.mxu0 %v3937_v43  ;;  %1189 = vmatpush1.bf16.msra.mxu1 %v3940_v49 }
  0x66   :  { %1108 = vmatprep.subr.bf16.mxu0 %v3945_v44  ;;  %1190 = vmatprep.subr.bf16.mxu1 %v3948_v50 }
  0x69   :  { %1109 = vmatpush1.bf16.msra.mxu0 %v3943_v47  ;;  %1191 = vmatpush1.bf16.msra.mxu1 %v3946_v51  ;;  %v4003_v51 = vld [vmem:[#allocation2 + $0x220] ss:$16 sps:$4 sm:$0xff]  }
  0x6a   :  { %1110 = vmatprep.subr.bf16.mxu0 %v3951_v48  ;;  %1192 = vmatprep.subr.bf16.mxu1 %v3954_v53 }
  0x6d   :  { %1111 = vmatpush1.bf16.msra.mxu0 %v3949_v52  ;;  %1193 = vmatpush1.bf16.msra.mxu1 %v3952_v57  ;;  %v4006_v52 = vld [vmem:[#allocation2 + $0x228] ss:$16 sps:$4 sm:$0xff]   ;;  %v4009_v57 = vld [vmem:[#allocation2 + $0x240] ss:$16 sps:$4 sm:$0xff]  }
  0x6e   :  { %1112 = vmatprep.subr.bf16.mxu0 %v3957_v54  ;;  %1194 = vmatprep.subr.bf16.mxu1 %v3960_v58  ;;  %v4011_v54 = vld [vmem:[#allocation2 + $0x244] ss:$16 sps:$4 sm:$0xff]   ;;  %v4012_v58 = vld [vmem:[#allocation2 + $0x248] ss:$16 sps:$4 sm:$0xff]  }
  0x71   :  { %1113 = vmatpush1.bf16.msra.mxu0 %v3955_v55  ;;  %1195 = vmatpush1.bf16.msra.mxu1 %v3958_v61  ;;  %v4014_v55 = vld [vmem:[#allocation2 + $0x24c] ss:$16 sps:$4 sm:$0xff]   ;;  %v4015_v61 = vld [vmem:[#allocation2 + $0x260] ss:$16 sps:$4 sm:$0xff]  }
  0x72   :  { %1114 = vmatprep.subr.bf16.mxu0 %v3963_v56  ;;  %1196 = vmatprep.subr.bf16.mxu1 %v3966_v62  ;;  %v4018_v62 = vld [vmem:[#allocation2 + $0x268] ss:$16 sps:$4 sm:$0xff]  }
  0x75   :  { %1115 = vmatpush1.bf16.msra.mxu0 %v3961_v59  ;;  %1197 = vmatpush1.bf16.msra.mxu1 %v3964_v2  ;;  %v4017_v59 = vld [vmem:[#allocation2 + $0x264] ss:$16 sps:$4 sm:$0xff]   ;;  %v4021_v2 = vld [vmem:[#allocation2 + $0x280] ss:$16 sps:$4 sm:$0xff]  }
  0x76   :  { %1116 = vmatprep.subr.bf16.mxu0 %v3969_v60  ;;  %1198 = vmatprep.subr.bf16.mxu1 %v3972_v3  ;;  %v4020_v60 = vld [vmem:[#allocation2 + $0x26c] ss:$16 sps:$4 sm:$0xff]   ;;  %v4024_v3 = vld [vmem:[#allocation2 + $0x288] ss:$16 sps:$4 sm:$0xff]  }
  0x79   :  { %1117 = vmatpush1.bf16.msra.mxu0 %v3967_v63  ;;  %1199 = vmatpush1.bf16.msra.mxu1 %v3970_v6  ;;  %v4023_v63 = vld [vmem:[#allocation2 + $0x284] ss:$16 sps:$4 sm:$0xff]   ;;  %v4027_v6 = vld [vmem:[#allocation2 + $0x2a0] ss:$16 sps:$4 sm:$0xff]  }
  0x7a   :  { %1118 = vmatprep.subr.bf16.mxu0 %v3975_v1  ;;  %1200 = vmatprep.subr.bf16.mxu1 %v3978_v7  ;;  %v4026_v1 = vld [vmem:[#allocation2 + $0x28c] ss:$16 sps:$4 sm:$0xff]   ;;  %v4030_v7 = vld [vmem:[#allocation2 + $0x2a8] ss:$16 sps:$4 sm:$0xff]  }
  0x7d   :  { %1119 = vmatpush1.bf16.msra.mxu0 %v3973_v4  ;;  %1201 = vmatpush1.bf16.msra.mxu1 %v3976_v9  ;;  %v4029_v4 = vld [vmem:[#allocation2 + $0x2a4] ss:$16 sps:$4 sm:$0xff]   ;;  %v4038_v9 = vld [vmem:[#allocation2 + $0x2cc] ss:$16 sps:$4 sm:$0xff]  }
  0x7e   :  { %1120 = vmatprep.subr.bf16.mxu0 %v3981_v5  ;;  %1202 = vmatprep.subr.bf16.mxu1 %v3984_v10  ;;  %v4032_v5 = vld [vmem:[#allocation2 + $0x2ac] ss:$16 sps:$4 sm:$0xff]   ;;  %v4033_v10 = vld [vmem:[#allocation2 + $0x2c0] ss:$16 sps:$4 sm:$0xff]  }
  0x81   :  { %1121 = vmatpush1.bf16.msra.mxu0 %v3979_v8  ;;  %1203 = vmatpush1.bf16.msra.mxu1 %v3982_v11  ;;  %v4035_v8 = vld [vmem:[#allocation2 + $0x2c4] ss:$16 sps:$4 sm:$0xff]   ;;  %v4036_v11 = vld [vmem:[#allocation2 + $0x2c8] ss:$16 sps:$4 sm:$0xff]  }
  0x82   :  { %1122 = vmatprep.subr.bf16.mxu0 %v3987_v12  ;;  %1204 = vmatprep.subr.bf16.mxu1 %v3990_v13  ;;  %v4041_v12 = vld [vmem:[#allocation2 + $0x2e4] ss:$16 sps:$4 sm:$0xff]   ;;  %v4044_v13 = vld [vmem:[#allocation2 + $0x2ec] ss:$16 sps:$4 sm:$0xff]  }
  0x85   :  { %1123 = vmatpush1.bf16.msra.mxu0 %v3985_v14  ;;  %1205 = vmatpush1.bf16.msra.mxu1 %v3988_v15  ;;  %v4039_v14 = vld [vmem:[#allocation2 + $0x2e0] ss:$16 sps:$4 sm:$0xff]   ;;  %v4042_v15 = vld [vmem:[#allocation2 + $0x2e8] ss:$16 sps:$4 sm:$0xff]  }
  0x86   :  { %1124 = vmatprep.subr.bf16.mxu0 %v3993_v16  ;;  %1206 = vmatprep.subr.bf16.mxu1 %v3996_v18  ;;  %v4047_v16 = vld [vmem:[#allocation2 + $0x304] ss:$16 sps:$4 sm:$0xff]   ;;  %v4050_v18 = vld [vmem:[#allocation2 + $0x30c] ss:$16 sps:$4 sm:$0xff]  }
  0x89   :  { %1125 = vmatpush1.bf16.msra.mxu0 %v3991_v19  ;;  %1207 = vmatpush1.bf16.msra.mxu1 %v3994_v20  ;;  %v4045_v19 = vld [vmem:[#allocation2 + $0x300] ss:$16 sps:$4 sm:$0xff]   ;;  %v4048_v20 = vld [vmem:[#allocation2 + $0x308] ss:$16 sps:$4 sm:$0xff]  }
  0x8a   :  { %1135 = vmatprep.subr.bf16.mxu0 %v3999_v21  ;;  %1217 = vmatprep.subr.bf16.mxu1 %v4002_v22  ;;  %v4053_v21 = vld [vmem:[#allocation2 + $0x324] ss:$16 sps:$4 sm:$0xff]   ;;  %v4056_v22 = vld [vmem:[#allocation2 + $0x32c] ss:$16 sps:$4 sm:$0xff]  }
 0x11f   :  { %v248_v30 = vpop.f32.mrb[0].mxu0  ;;  %v4805_v43 = vpop.f32.mrb[0].mxu1 }
 0x120   :  { %v249_v32 = vadd.f32 %v248_v30, %v113_v28  ;;  %v250_v33 = vpop.f32.mrb[1].mxu0  ;;  %v291_v47 = vpop.f32.mrb[1].mxu1  ;;  %v4054_v28 = vld [vmem:[#allocation2 + $0x328] ss:$16 sps:$4 sm:$0xff]   ;;  %v4062_v30 = vld [vmem:[#allocation2 + $0x34c] ss:$16 sps:$4 sm:$0xff]  }
 0x121   :  { %v251_v34 = vadd.f32 %v250_v33, %v117_v29  ;;  %v252_v35 = vpop.f32.mrb[2].mxu0  ;;  %v292_v48 = vadd.f32 %v291_v47, %v125_v39  ;;  %v293_v49 = vpop.f32.mrb[2].mxu1  ;;  %v4059_v29 = vld [vmem:[#allocation2 + $0x344] ss:$16 sps:$4 sm:$0xff]   ;;  %v4060_v33 = vld [vmem:[#allocation2 + $0x348] ss:$16 sps:$4 sm:$0xff]  }
 0x122   :  { %v296_v36 = vmax.f32 %v249_v32, 0.0  ;;  %v253_v37 = vpop.f32.mrb[3].mxu0  ;;  %v294_v50 = vpop.f32.mrb[3].mxu1  ;;  %v4057_v32 = vld [vmem:[#allocation2 + $0x340] ss:$16 sps:$4 sm:$0xff]  }
 0x123   :  { %v297_v38 = vmax.f32 %v251_v34, 0.0  ;;  %v299_v53 = vmax.f32 %v292_v48, 0.0  ;;  %v4065_v34 = vld [vmem:[#allocation2 + $0x364] ss:$16 sps:$4 sm:$0xff]   ;;  %v4068_v35 = vld [vmem:[#allocation2 + $0x36c] ss:$16 sps:$4 sm:$0xff]  }
 0x124   :  { %v300_v44 = vpack.c.bf16 %v296_v36, %v296_v36  ;;  %v4063_v36 = vld [vmem:[#allocation2 + $0x360] ss:$16 sps:$4 sm:$0xff]   ;;  %v4066_v37 = vld [vmem:[#allocation2 + $0x368] ss:$16 sps:$4 sm:$0xff]   ;;  %v4074_v39 = vld [vmem:[#allocation2 + $0x38c] ss:$16 sps:$4 sm:$0xff]  }
 0x125   :  { %v301_v40 = vpack.c.bf16 %v297_v38, %v297_v38  ;;  %v303_v56 = vpack.c.bf16 %v299_v53, %v299_v53  ;;  %v4071_v38 = vld [vmem:[#allocation2 + $0x384] ss:$16 sps:$4 sm:$0xff]   ;;  %v4078_v47 = vld [vmem:[#allocation2 + $0x3a8] ss:$16 sps:$4 sm:$0xff]   ;;  %v4086_v50 = vld [vmem:[#allocation2 + $0x3cc] ss:$16 sps:$4 sm:$0xff]  }
 0x126   :  { %v4083_v49 = vld [vmem:[#allocation2 + $0x3c4] ss:$16 sps:$4 sm:$0xff]  }
 0x127   :  { %1126 = vmatprep.mubr.bf16.mxu0 %v301_v40  ;;  %1208 = vmatprep.mubr.bf16.mxu1 %v301_v40  ;;  %v4069_v40 = vld [vmem:[#allocation2 + $0x380] ss:$16 sps:$4 sm:$0xff]   ;;  %v4089_v53 = vld [vmem:[#allocation2 + $0x3e4] ss:$16 sps:$4 sm:$0xff]  }
 0x128   :  { %1127 = vmatmul.mubr.bf16.vlgmr.msra.gmra.mrb[4].mxu0 %v300_v44  ;;  %1209 = vmatmul.mubr.bf16.vlgmr.msra.gmra.mrb[4].mxu1 %v300_v44  ;;  %v4077_v44 = vld [vmem:[#allocation2 + $0x3a4] ss:$16 sps:$4 sm:$0xff]  }
 0x129   :  { %1136 = vmatpush1.bf16.msra.mxu0 %v3997_v41  ;;  %1218 = vmatpush1.bf16.msra.mxu1 %v4000_v42  ;;  %v4072_v41 = vld [vmem:[#allocation2 + $0x388] ss:$16 sps:$4 sm:$0xff]   ;;  %v4808_v42 = vsub.s32 2, %v4783_v24 }
 0x12a   :  { %1137 = vmatprep.subr.bf16.mxu0 %v4005_v45  ;;  %1219 = vmatprep.subr.bf16.mxu1 %v4008_v46  ;;  %v4080_v45 = vld [vmem:[#allocation2 + $0x3ac] ss:$16 sps:$4 sm:$0xff]   ;;  %v4075_v46 = vld [vmem:[#allocation2 + $0x3a0] ss:$16 sps:$4 sm:$0xff]  }
 0x12b   :  { %1167 = vmatprep.mubr.bf16.mxu0 %v303_v56  ;;  %1249 = vmatprep.mubr.bf16.mxu1 %v303_v56  ;;  %v121_v48 = vrot.slane %v4791_v26, %v4808_v42  ;;  %v4090_v56 = vld [vmem:[#allocation2 + $0x3e8] ss:$16 sps:$4 sm:$0xff]   ;;  %v4093_v26 = vld [vmem:[%s5207_s6 + $0x40] sm:$0xff]  }
 0x12d   :  { %1138 = vmatpush1.bf16.msra.mxu0 %v4003_v51  ;;  %1220 = vmatpush1.bf16.msra.mxu1 %v4006_v52  ;;  %v4081_v51 = vld [vmem:[#allocation2 + $0x3c0] ss:$16 sps:$4 sm:$0xff]   ;;  %v4084_v52 = vld [vmem:[#allocation2 + $0x3c8] ss:$16 sps:$4 sm:$0xff]   ;;  %v290_v24 = vadd.f32 %v4805_v43, %v121_v48 }
 0x12e   :  { %1139 = vmatprep.subr.bf16.mxu0 %v4011_v54  ;;  %1221 = vmatprep.subr.bf16.mxu1 %v4014_v55  ;;  %v4092_v54 = vld [vmem:[#allocation2 + $0x3ec] ss:$16 sps:$4 sm:$0xff]   ;;  %v4087_v55 = vld [vmem:[#allocation2 + $0x3e0] ss:$16 sps:$4 sm:$0xff]  }
 0x12f   :  { %v4095_v43 = vld [vmem:[%s5207_s6] sm:$0xff]  }
 0x131   :  { %1140 = vmatpush1.bf16.msra.mxu0 %v4009_v57  ;;  %1222 = vmatpush1.bf16.msra.mxu1 %v4012_v58  ;;  %v298_v57 = vmax.f32 %v290_v24, 0.0  ;;  %v4094_v58 = vld [vmem:[%s5207_s6 + $0xc0] sm:$0xff]  }
 0x132   :  { %1141 = vmatprep.subr.bf16.mxu0 %v4017_v59  ;;  %1223 = vmatprep.subr.bf16.mxu1 %v4020_v60  ;;  %v4096_v59 = vld [vmem:[%s5207_s6 + $0x80] sm:$0xff]  }
 0x133   :  { %v302_v60 = vpack.c.bf16 %v298_v57, %v298_v57 }
 0x135   :  { %1142 = vmatpush1.bf16.msra.mxu0 %v4015_v61  ;;  %1224 = vmatpush1.bf16.msra.mxu1 %v4018_v62  ;;  %v4097_v61 = vld [vmem:[%s5207_s6 + $0x48] sm:$0xff]  }
 0x136   :  { %1143 = vmatprep.subr.bf16.mxu0 %v4023_v63  ;;  %1225 = vmatprep.subr.bf16.mxu1 %v4026_v1  ;;  %v4098_v62 = vld [vmem:[%s5207_s6 + $0xc8] sm:$0xff]  }
 0x137   :  { %v4099_v63 = vld [vmem:[%s5207_s6 + $0x8] sm:$0xff]  }
 0x138   :  { %v4100_v1 = vld [vmem:[%s5207_s6 + $0x88] sm:$0xff]  }
 0x139   :  { %1144 = vmatpush1.bf16.msra.mxu0 %v4021_v2  ;;  %1226 = vmatpush1.bf16.msra.mxu1 %v4024_v3  ;;  %v4101_v2 = vld [vmem:[%s5207_s6 + $0x50] sm:$0xff]  }
 0x13a   :  { %1145 = vmatprep.subr.bf16.mxu0 %v4029_v4  ;;  %1227 = vmatprep.subr.bf16.mxu1 %v4032_v5  ;;  %v4102_v3 = vld [vmem:[%s5207_s6 + $0xd0] sm:$0xff]  }
 0x13b   :  { %v4103_v4 = vld [vmem:[%s5207_s6 + $0x10] sm:$0xff]  }
 0x13c   :  { %v4104_v5 = vld [vmem:[%s5207_s6 + $0x90] sm:$0xff]  }
 0x13d   :  { %1146 = vmatpush1.bf16.msra.mxu0 %v4027_v6  ;;  %1228 = vmatpush1.bf16.msra.mxu1 %v4030_v7  ;;  %v4105_v6 = vld [vmem:[%s5207_s6 + $0x58] sm:$0xff]  }
 0x13e   :  { %1147 = vmatprep.subr.bf16.mxu0 %v4035_v8  ;;  %1229 = vmatprep.subr.bf16.mxu1 %v4038_v9  ;;  %v4106_v7 = vld [vmem:[%s5207_s6 + $0xd8] sm:$0xff]  }
 0x13f   :  { %v4107_v8 = vld [vmem:[%s5207_s6 + $0x18] sm:$0xff]  }
 0x140   :  { %v4108_v9 = vld [vmem:[%s5207_s6 + $0x98] sm:$0xff]  }
 0x141   :  { %1148 = vmatpush1.bf16.msra.mxu0 %v4033_v10  ;;  %1230 = vmatpush1.bf16.msra.mxu1 %v4036_v11  ;;  %v4109_v10 = vld [vmem:[%s5207_s6 + $0x60] sm:$0xff]  }
 0x142   :  { %1149 = vmatprep.subr.bf16.mxu0 %v4041_v12  ;;  %1231 = vmatprep.subr.bf16.mxu1 %v4044_v13  ;;  %v4110_v11 = vld [vmem:[%s5207_s6 + $0xe0] sm:$0xff]  }
 0x143   :  { %v4111_v12 = vld [vmem:[%s5207_s6 + $0x20] sm:$0xff]  }
 0x144   :  { %v4112_v13 = vld [vmem:[%s5207_s6 + $0xa0] sm:$0xff]  }
 0x145   :  { %1150 = vmatpush1.bf16.msra.mxu0 %v4039_v14  ;;  %1232 = vmatpush1.bf16.msra.mxu1 %v4042_v15  ;;  %v4113_v14 = vld [vmem:[%s5207_s6 + $0x68] sm:$0xff]  }
 0x146   :  { %1151 = vmatprep.subr.bf16.mxu0 %v4047_v16  ;;  %1233 = vmatprep.subr.bf16.mxu1 %v4050_v18  ;;  %v4114_v15 = vld [vmem:[%s5207_s6 + $0xe8] sm:$0xff]  }
 0x147   :  { %v4115_v16 = vld [vmem:[%s5207_s6 + $0x28] sm:$0xff]  }
 0x148   :  { %v4116_v18 = vld [vmem:[%s5207_s6 + $0xa8] sm:$0xff]  }
 0x149   :  { %1152 = vmatpush1.bf16.msra.mxu0 %v4045_v19  ;;  %1234 = vmatpush1.bf16.msra.mxu1 %v4048_v20  ;;  %v4117_v19 = vld [vmem:[%s5207_s6 + $0x70] sm:$0xff]  }
 0x14a   :  { %1153 = vmatprep.subr.bf16.mxu0 %v4053_v21  ;;  %1235 = vmatprep.subr.bf16.mxu1 %v4056_v22  ;;  %v4118_v20 = vld [vmem:[%s5207_s6 + $0xf0] sm:$0xff]  }
 0x14b   :  { %v4119_v21 = vld [vmem:[%s5207_s6 + $0x30] sm:$0xff]  }
 0x14c   :  { %v4120_v22 = vld [vmem:[%s5207_s6 + $0xb0] sm:$0xff]  }
 0x14d   :  { %1154 = vmatpush1.bf16.msra.mxu0 %v4051_v23  ;;  %1236 = vmatpush1.bf16.msra.mxu1 %v4054_v28  ;;  %v4121_v23 = vld [vmem:[%s5207_s6 + $0x78] sm:$0xff]  }
 0x14e   :  { %1155 = vmatprep.subr.bf16.mxu0 %v4059_v29  ;;  %1237 = vmatprep.subr.bf16.mxu1 %v4062_v30  ;;  %v4122_v28 = vld [vmem:[%s5207_s6 + $0xf8] sm:$0xff]  }
 0x14f   :  { %v4123_v29 = vld [vmem:[%s5207_s6 + $0x38] sm:$0xff]  }
 0x150   :  { %v4124_v30 = vld [vmem:[%s5207_s6 + $0xb8] sm:$0xff]  }
 0x151   :  { %1156 = vmatpush1.bf16.msra.mxu0 %v4057_v32  ;;  %1238 = vmatpush1.bf16.msra.mxu1 %v4060_v33  ;;  %v432_v32 = vld [vmem:[%s5206_s5] sm:$0xf] }
 0x152   :  { %1157 = vmatprep.subr.bf16.mxu0 %v4065_v34  ;;  %1239 = vmatprep.subr.bf16.mxu1 %v4068_v35  ;;  %v437_v33 = vrot.slane %v432_v32, %v4786_v25  ;;  %v445_v34 = vrot.slane %v432_v32, %v4808_v42  ;;  %v441_v35 = vrot.slane %v432_v32, %v4794_v27 }
 0x155   :  { %1158 = vmatpush1.bf16.msra.mxu0 %v4063_v36  ;;  %1240 = vmatpush1.bf16.msra.mxu1 %v4066_v37  ;;  %v449_v36 = vrot.slane %v432_v32, %v4801_v31 }
 0x156   :  { %1159 = vmatprep.subr.bf16.mxu0 %v4071_v38  ;;  %1241 = vmatprep.subr.bf16.mxu1 %v4074_v39 }
 0x159   :  { %1160 = vmatpush1.bf16.msra.mxu0 %v4069_v40  ;;  %1242 = vmatpush1.bf16.msra.mxu1 %v4072_v41 }
 0x15a   :  { %1161 = vmatprep.subr.bf16.mxu0 %v4077_v44  ;;  %1243 = vmatprep.subr.bf16.mxu1 %v4080_v45 }
 0x15d   :  { %1162 = vmatpush1.bf16.msra.mxu0 %v4075_v46  ;;  %1244 = vmatpush1.bf16.msra.mxu1 %v4078_v47 }
 0x15e   :  { %1163 = vmatprep.subr.bf16.mxu0 %v4083_v49  ;;  %1245 = vmatprep.subr.bf16.mxu1 %v4086_v50 }
 0x161   :  { %1164 = vmatpush1.bf16.msra.mxu0 %v4081_v51  ;;  %1246 = vmatpush1.bf16.msra.mxu1 %v4084_v52 }
 0x162   :  { %1165 = vmatprep.subr.bf16.mxu0 %v4089_v53  ;;  %1247 = vmatprep.subr.bf16.mxu1 %v4092_v54 }
 0x165   :  { %1166 = vmatpush1.bf16.msra.mxu0 %v4087_v55  ;;  %1248 = vmatpush1.bf16.msra.mxu1 %v4090_v56 }
 0x166   :  { %3752 = vmatprep.subr.bf16.mxu0 %v4093_v26  ;;  %3774 = vmatprep.subr.bf16.mxu1 %v4094_v58 }
 0x168   :  { %1168 = vmatmul.mubr.bf16.vlgmr.msra.gmra.mrb[4].mxu0 %v302_v60  ;;  %1250 = vmatmul.mubr.bf16.vlgmr.msra.gmra.mrb[4].mxu1 %v302_v60 }
 0x169   :  { %3753 = vmatpush3.bf16.msra.mxu0 %v4095_v43  ;;  %3775 = vmatpush3.bf16.msra.mxu1 %v4096_v59  ;;  %v3534_v43 = vld [vmem:[%s5208_s7] ss:$0 sm:$0xff] }
 0x16a   :  { %3754 = vmatprep.subr.bf16.mxu0 %v4097_v61  ;;  %3776 = vmatprep.subr.bf16.mxu1 %v4098_v62 }
 0x16d   :  { %3755 = vmatpush3.bf16.msra.mxu0 %v4099_v63  ;;  %3777 = vmatpush3.bf16.msra.mxu1 %v4100_v1 }
 0x16e   :  { %3756 = vmatprep.subr.bf16.mxu0 %v4101_v2  ;;  %3778 = vmatprep.subr.bf16.mxu1 %v4102_v3 }
 0x171   :  { %3757 = vmatpush3.bf16.msra.mxu0 %v4103_v4  ;;  %3779 = vmatpush3.bf16.msra.mxu1 %v4104_v5  ;;  %v91_v5 = vld [vmem:[%s5236_s11] sm:$0xff] }
 0x172   :  { %3758 = vmatprep.subr.bf16.mxu0 %v4105_v6  ;;  %3780 = vmatprep.subr.bf16.mxu1 %v4106_v7 }
 0x175   :  { %3759 = vmatpush3.bf16.msra.mxu0 %v4107_v8  ;;  %3781 = vmatpush3.bf16.msra.mxu1 %v4108_v9 }
 0x176   :  { %3760 = vmatprep.subr.bf16.mxu0 %v4109_v10  ;;  %3782 = vmatprep.subr.bf16.mxu1 %v4110_v11 }
 0x179   :  { %3761 = vmatpush3.bf16.msra.mxu0 %v4111_v12  ;;  %3783 = vmatpush3.bf16.msra.mxu1 %v4112_v13 }
 0x17a   :  { %3762 = vmatprep.subr.bf16.mxu0 %v4113_v14  ;;  %3784 = vmatprep.subr.bf16.mxu1 %v4114_v15 }
 0x17d   :  { %3763 = vmatpush3.bf16.msra.mxu0 %v4115_v16  ;;  %3785 = vmatpush3.bf16.msra.mxu1 %v4116_v18 }
 0x17e   :  { %3764 = vmatprep.subr.bf16.mxu0 %v4117_v19  ;;  %3786 = vmatprep.subr.bf16.mxu1 %v4118_v20 }
 0x181   :  { %3765 = vmatpush3.bf16.msra.mxu0 %v4119_v21  ;;  %3787 = vmatpush3.bf16.msra.mxu1 %v4120_v22  ;;  %v4127_v21 = vld [vmem:[%s5210_s9 + $0x4] ss:$16 sps:$4 sm:$0xff]   ;;  %v4130_v22 = vld [vmem:[%s5210_s9 + $0xc] ss:$16 sps:$4 sm:$0xff]  }
 0x182   :  { %3766 = vmatprep.subr.bf16.mxu0 %v4121_v23  ;;  %3788 = vmatprep.subr.bf16.mxu1 %v4122_v28  ;;  %v4125_v23 = vld [vmem:[%s5210_s9] ss:$16 sps:$4 sm:$0xff]   ;;  %v4128_v28 = vld [vmem:[%s5210_s9 + $0x8] ss:$16 sps:$4 sm:$0xff]  }
 0x185   :  { %3767 = vmatpush3.bf16.msra.mxu0 %v4123_v29  ;;  %3789 = vmatpush3.bf16.msra.mxu1 %v4124_v30  ;;  %v4133_v29 = vld [vmem:[%s5209_s8 + $0x4] ss:$16 sps:$4 sm:$0xff]   ;;  %v4136_v30 = vld [vmem:[%s5209_s8 + $0xc] ss:$16 sps:$4 sm:$0xff]  }
 0x186   :  { %1680 = vmatprep.subr.bf16.mxu0 %v4127_v21  ;;  %1721 = vmatprep.subr.bf16.mxu1 %v4130_v22  ;;  %v4208_v21 = vld [vmem:[#allocation5 + $0x10c] ss:$16 sps:$4 sm:$0xff]   ;;  %v4203_v22 = vld [vmem:[#allocation5 + $0x100] ss:$16 sps:$4 sm:$0xff]  }
 0x23b   :  { %v1169_v37 = vpop.f32.mrb[4].mxu0  ;;  %v1251_v38 = vpop.f32.mrb[4].mxu1 }
 0x23c   :  { %v3840_v39 = vadd.f32 %v1169_v37, %v437_v33  ;;  %v3842_v40 = vadd.f32 %v1251_v38, %v445_v34  ;;  %v1171_v41 = vpop.f32.mrb[5].mxu0  ;;  %v1253_v44 = vpop.f32.mrb[5].mxu1  ;;  %v4134_v37 = vld [vmem:[%s5209_s8 + $0x8] ss:$16 sps:$4 sm:$0xff]  }
 0x23d   :  { %v3841_v45 = vadd.f32 %v1171_v41, %v441_v35  ;;  %v3843_v46 = vadd.f32 %v1253_v44, %v449_v36  ;;  %v1173_v47 = vpop.f32.mrb[6].mxu0  ;;  %v1255_v48 = vpop.f32.mrb[6].mxu1  ;;  %v4131_v36 = vld [vmem:[%s5209_s8] ss:$16 sps:$4 sm:$0xff]  }
 0x23e   :  { %v1258_v49 = vmax.f32 %v3840_v39, 0.0  ;;  %v1260_v50 = vmax.f32 %v3842_v40, 0.0  ;;  %v1174_v51 = vpop.f32.mrb[7].mxu0  ;;  %v1256_v52 = vpop.f32.mrb[7].mxu1  ;;  %v4139_v39 = vld [vmem:[%s5209_s8 + $0x24] ss:$16 sps:$4 sm:$0xff]  }
 0x23f   :  { %v1259_v24 = vmax.f32 %v3841_v45, 0.0  ;;  %v1261_v53 = vmax.f32 %v3843_v46, 0.0  ;;  %v4142_v40 = vld [vmem:[%s5209_s8 + $0x2c] ss:$16 sps:$4 sm:$0xff]   ;;  %v4137_v45 = vld [vmem:[%s5209_s8 + $0x20] ss:$16 sps:$4 sm:$0xff]  }
 0x240   :  { %v1262_v56 = vpack.c.bf16 %v1258_v49, %v1258_v49  ;;  %v1264_v57 = vpack.c.bf16 %v1260_v50, %v1260_v50  ;;  %v4140_v46 = vld [vmem:[%s5209_s8 + $0x28] ss:$16 sps:$4 sm:$0xff]   ;;  %v4145_v47 = vld [vmem:[%s5209_s8 + $0x44] ss:$16 sps:$4 sm:$0xff]   ;;  %v4148_v48 = vld [vmem:[%s5209_s8 + $0x4c] ss:$16 sps:$4 sm:$0xff]  }
 0x241   :  { %v1263_v54 = vpack.c.bf16 %v1259_v24, %v1259_v24  ;;  %v1265_v55 = vpack.c.bf16 %v1261_v53, %v1261_v53  ;;  %v4143_v49 = vld [vmem:[%s5209_s8 + $0x40] ss:$16 sps:$4 sm:$0xff]   ;;  %v4146_v50 = vld [vmem:[%s5209_s8 + $0x48] ss:$16 sps:$4 sm:$0xff]   ;;  %v4151_v51 = vld [vmem:[%s5209_s8 + $0x64] ss:$16 sps:$4 sm:$0xff]  }
 0x242   :  { %v4149_v52 = vld [vmem:[%s5209_s8 + $0x60] ss:$16 sps:$4 sm:$0xff]   ;;  %v4152_v24 = vld [vmem:[%s5209_s8 + $0x68] ss:$16 sps:$4 sm:$0xff]   ;;  %v4157_v53 = vld [vmem:[#allocation5 + $0x4] ss:$16 sps:$4 sm:$0xff]  }
 0x243   :  { %1561 = vmatprep.mubr.bf16.mxu0 %v1263_v54  ;;  %1601 = vmatprep.mubr.bf16.mxu1 %v1265_v55  ;;  %v4160_v54 = vld [vmem:[#allocation5 + $0xc] ss:$16 sps:$4 sm:$0xff]   ;;  %v4155_v55 = vld [vmem:[#allocation5] ss:$16 sps:$4 sm:$0xff]  }
 0x244   :  { %1562 = vmatmul.mubr.bf16.vlgmr.msra.gmra.mrb[8].mxu0 %v1262_v56  ;;  %1602 = vmatmul.mubr.bf16.vlgmr.msra.gmra.mrb[8].mxu1 %v1264_v57  ;;  %v4158_v56 = vld [vmem:[#allocation5 + $0x8] ss:$16 sps:$4 sm:$0xff]   ;;  %v4163_v57 = vld [vmem:[#allocation5 + $0x24] ss:$16 sps:$4 sm:$0xff]  }
 0x245   :  { %1712 = vmatprep.mubr.bf16.mxu0 %v4586_v0  ;;  %1753 = vmatprep.mubr.bf16.mxu1 %v4586_v0 }
 0x246   :  { %1681 = vmatpush1.bf16.msra.mxu0 %v4125_v23  ;;  %1722 = vmatpush1.bf16.msra.mxu1 %v4128_v28  ;;  %v4206_v23 = vld [vmem:[#allocation5 + $0x108] ss:$16 sps:$4 sm:$0xff]   ;;  %v4211_v28 = vld [vmem:[#allocation5 + $0x124] ss:$16 sps:$4 sm:$0xff]  }
 0x247   :  { %1842 = vmatprep.subr.bf16.mxu0 %v4133_v29  ;;  %1883 = vmatprep.subr.bf16.mxu1 %v4136_v30  ;;  %v4214_v29 = vld [vmem:[#allocation5 + $0x12c] ss:$16 sps:$4 sm:$0xff]   ;;  %v4209_v30 = vld [vmem:[#allocation5 + $0x120] ss:$16 sps:$4 sm:$0xff]  }
 0x317   :  { %v3768_v26 = vpop.f32.mrb[8].mxu0  ;;  %v3790_v58 = vpop.f32.mrb[8].mxu1 }
 0x318   :  { %v3769_v59 = vpop.f32.mrb[9].mxu0  ;;  %v3791_v60 = vpop.f32.mrb[9].mxu1 }
 0x319   :  { %v3770_v61 = vadd.f32 %v3769_v59, %v3768_v26  ;;  %v3792_v62 = vadd.f32 %v3791_v60, %v3790_v58  ;;  %v3771_v63 = vpop.f32.mrb[10].mxu0  ;;  %v3793_v1 = vpop.f32.mrb[10].mxu1  ;;  %v4166_v26 = vld [vmem:[#allocation5 + $0x2c] ss:$16 sps:$4 sm:$0xff]   ;;  %v4161_v58 = vld [vmem:[#allocation5 + $0x20] ss:$16 sps:$4 sm:$0xff]  }
 0x31a   :  { %v3772_v2 = vpop.f32.mrb[11].mxu0  ;;  %v3794_v3 = vpop.f32.mrb[11].mxu1  ;;  %v4169_v59 = vld [vmem:[#allocation5 + $0x44] ss:$16 sps:$4 sm:$0xff]   ;;  %v4172_v60 = vld [vmem:[#allocation5 + $0x4c] ss:$16 sps:$4 sm:$0xff]  }
 0x31b   :  { %v1564_v4 = vadd.f32 %v3770_v61, %v3534_v43  ;;  %v4164_v43 = vld [vmem:[#allocation5 + $0x28] ss:$16 sps:$4 sm:$0xff]   ;;  %v4167_v61 = vld [vmem:[#allocation5 + $0x40] ss:$16 sps:$4 sm:$0xff]   ;;  %v4175_v63 = vld [vmem:[#allocation5 + $0x64] ss:$16 sps:$4 sm:$0xff]  }
 0x31c   :  { %v4178_v1 = vld [vmem:[#allocation5 + $0x6c] ss:$16 sps:$4 sm:$0xff]   ;;  %v4173_v2 = vld [vmem:[#allocation5 + $0x60] ss:$16 sps:$4 sm:$0xff]   ;;  %v4181_v3 = vld [vmem:[#allocation5 + $0x84] ss:$16 sps:$4 sm:$0xff]  }
 0x31d   :  { %v1604_v6 = vadd.f32 %v3792_v62, %v1564_v4  ;;  %v4170_v62 = vld [vmem:[#allocation5 + $0x48] ss:$16 sps:$4 sm:$0xff]   ;;  %v4184_v4 = vld [vmem:[#allocation5 + $0x8c] ss:$16 sps:$4 sm:$0xff]  }
 0x31f   :  { %v1611_v7 = vsel %vm1609_vm1, %v1604_v6, -inf  ;;  %1610 = vst.msk [vmem:[#allocation7] sm:$0xff] %vm1609_vm1, %v1604_v6  ;;  %v1623_v8 = vadd.f32 %v1604_v6, %v91_v5  ;;  %v4179_v5 = vld [vmem:[#allocation5 + $0x80] ss:$16 sps:$4 sm:$0xff]  }
 0x320   :  { %1612 = vmax.xlane.f32.xlu1 %v1611_v7  ;;  %v4187_v7 = vld [vmem:[#allocation5 + $0xa4] ss:$16 sps:$4 sm:$0xff]  }
 0x321   :  { %v1624_v9 = vsel %vm1609_vm1, %v1623_v8, -inf }
 0x322   :  { %1625 = vmax.xlane.f32.xlu0 %v1624_v9  ;;  %v4185_v9 = vld [vmem:[#allocation5 + $0xa0] ss:$16 sps:$4 sm:$0xff]  }
 0x3ad   :  { %v1613_v10 = vpop.xlane.xlu1 %1612 }
 0x3ae   :  { %v1614_v11 = vsub.f32 %v1604_v6, %v1613_v10  ;;  %v4182_v6 = vld [vmem:[#allocation5 + $0x88] ss:$16 sps:$4 sm:$0xff]  }
 0x3af   :  { %v1626_v12 = vpop.xlane.xlu0 %1625  ;;  %v4188_v10 = vld [vmem:[#allocation5 + $0xa8] ss:$16 sps:$4 sm:$0xff]  }
 0x3b0   :  { %v1627_v13 = vsub.f32 %v1623_v8, %v1626_v12  ;;  %v1615_v14 = vmul.f32 1.442695, %v1614_v11  ;;  %v4190_v8 = vld [vmem:[#allocation5 + $0xac] ss:$16 sps:$4 sm:$0xff]   ;;  %v4193_v11 = vld [vmem:[#allocation5 + $0xc4] ss:$16 sps:$4 sm:$0xff]  }
 0x3b1   :  { %v4196_v12 = vld [vmem:[#allocation5 + $0xcc] ss:$16 sps:$4 sm:$0xff]  }
 0x3b2   :  { %v1628_v15 = vmul.f32 1.442695, %v1627_v13  ;;  %v4191_v13 = vld [vmem:[#allocation5 + $0xc0] ss:$16 sps:$4 sm:$0xff]  }
 0x3b4   :  { %4379 = vpow2.f32 %v1628_v15  ;;  %v4199_v15 = vld [vmem:[#allocation5 + $0xe4] ss:$16 sps:$4 sm:$0xff]  }
 0x3b5   :  { %4381 = vpow2.f32 %v1615_v14  ;;  %v4194_v14 = vld [vmem:[#allocation5 + $0xc8] ss:$16 sps:$4 sm:$0xff]  }
 0x3be   :  { %v4380_v16 = vpop.eup %4379 }
 0x3bf   :  { %v1630_v18 = vsel %vm1609_vm1, %v4380_v16, 0.0  ;;  %v4382_v19 = vpop.eup %4381 }
 0x3c0   :  { %1631 = vadd.xlane.f32.xlu0 %v1630_v18  ;;  %v1617_v20 = vsel %vm1609_vm1, %v4382_v19, 0.0  ;;  %v4197_v18 = vld [vmem:[#allocation5 + $0xe0] ss:$16 sps:$4 sm:$0xff]  }
 0x3c4   :  { %1618 = vadd.xlane.f32.xlu0 %v1617_v20  ;;  %v4205_v20 = vld [vmem:[#allocation5 + $0x104] ss:$16 sps:$4 sm:$0xff]  }
 0x44d   :  { %v1632_v32 = vpop.xlane.xlu0 %1631 }
 0x44e   :  { %4383 = vrcp.f32 %v1632_v32  ;;  %v4212_v32 = vld [vmem:[#allocation5 + $0x128] ss:$16 sps:$4 sm:$0xff]  }
 0x451   :  { %v1619_v33 = vpop.xlane.xlu0 %1618 }
 0x452   :  { %4385 = vrcp.f32 %v1619_v33  ;;  %v4217_v33 = vld [vmem:[#allocation5 + $0x144] ss:$16 sps:$4 sm:$0xff]  }
 0x458   :  { %v4384_v34 = vpop.eup %4383 }
 0x459   :  { %v1634_v35 = vmul.f32 %v4384_v34, %v4380_v16  ;;  %v4202_v16 = vld [vmem:[#allocation5 + $0xec] ss:$16 sps:$4 sm:$0xff]  }
 0x45a   :  { %v4220_v34 = vld [vmem:[#allocation5 + $0x14c] ss:$16 sps:$4 sm:$0xff]  }
 0x45b   :  { %1635 = vst.msk [vmem:[#allocation10] sm:$0xff] %vm1609_vm1, %v1634_v35  ;;  %v1652_v38 = vpack.c.bf16 %v1634_v35, %v1634_v35  ;;  %v4215_v35 = vld [vmem:[#allocation5 + $0x140] ss:$16 sps:$4 sm:$0xff]  }
 0x45c   :  { %v4386_v41 = vpop.eup %4385 }
 0x45d   :  { %3571 = vmatmul.mubr.msk.bf16.vlgmr.msra.gmra.mrb[12].mxu0 %vm1609_vm1, %v1652_v38  ;;  %3572 = vmatmul.mubr.msk.bf16.vlgmr.msra.gmra.mrb[12].mxu1 %vm1609_vm1, %v1652_v38  ;;  %v1621_v44 = vmul.f32 %v4386_v41, %v4382_v19  ;;  %v4200_v19 = vld [vmem:[#allocation5 + $0xe8] ss:$16 sps:$4 sm:$0xff]   ;;  %v4223_v38 = vld [vmem:[#allocation5 + $0x164] ss:$16 sps:$4 sm:$0xff]  }
 0x45e   :  { %1843 = vmatpush1.bf16.msra.mxu0 %v4131_v36  ;;  %1884 = vmatpush1.bf16.msra.mxu1 %v4134_v37  ;;  %v4218_v36 = vld [vmem:[#allocation5 + $0x148] ss:$16 sps:$4 sm:$0xff]   ;;  %v4221_v37 = vld [vmem:[#allocation5 + $0x160] ss:$16 sps:$4 sm:$0xff]   ;;  %v4229_v41 = vld [vmem:[#allocation5 + $0x184] ss:$16 sps:$4 sm:$0xff]  }
 0x45f   :  { %1844 = vmatprep.subr.bf16.mxu0 %v4139_v39  ;;  %1885 = vmatprep.subr.bf16.mxu1 %v4142_v40  ;;  %1622 = vst.msk [vmem:[#allocation8] sm:$0xff] %vm1609_vm1, %v1621_v44  ;;  %v4224_v39 = vld [vmem:[#allocation5 + $0x168] ss:$16 sps:$4 sm:$0xff]   ;;  %v4226_v40 = vld [vmem:[#allocation5 + $0x16c] ss:$16 sps:$4 sm:$0xff]  }
 0x460   :  { %1874 = vmatprep.mubr.bf16.mxu0 %v4586_v0  ;;  %1915 = vmatprep.mubr.bf16.mxu1 %v4586_v0  ;;  %v4154_v0 = vld [vmem:[%s5209_s8 + $0x6c] ss:$16 sps:$4 sm:$0xff]  }
 0x461   :  { %v4232_v44 = vld [vmem:[#allocation5 + $0x18c] ss:$16 sps:$4 sm:$0xff]  }
 0x462   :  { %1845 = vmatpush1.bf16.msra.mxu0 %v4137_v45  ;;  %1886 = vmatpush1.bf16.msra.mxu1 %v4140_v46  ;;  %v4227_v45 = vld [vmem:[#allocation5 + $0x180] ss:$16 sps:$4 sm:$0xff]   ;;  %v4230_v46 = vld [vmem:[#allocation5 + $0x188] ss:$16 sps:$4 sm:$0xff]  }
 0x463   :  { %1846 = vmatprep.subr.bf16.mxu0 %v4145_v47  ;;  %1887 = vmatprep.subr.bf16.mxu1 %v4148_v48  ;;  %v4235_v47 = vld [vmem:[#allocation5 + $0x1a4] ss:$16 sps:$4 sm:$0xff]   ;;  %v4238_v48 = vld [vmem:[#allocation5 + $0x1ac] ss:$16 sps:$4 sm:$0xff]  }
 0x466   :  { %1847 = vmatpush1.bf16.msra.mxu0 %v4143_v49  ;;  %1888 = vmatpush1.bf16.msra.mxu1 %v4146_v50  ;;  %v4233_v49 = vld [vmem:[#allocation5 + $0x1a0] ss:$16 sps:$4 sm:$0xff]   ;;  %v4236_v50 = vld [vmem:[#allocation5 + $0x1a8] ss:$16 sps:$4 sm:$0xff]  }
 0x467   :  { %1848 = vmatprep.subr.bf16.mxu0 %v4151_v51  ;;  %1889 = vmatprep.subr.bf16.mxu1 %v4154_v0  ;;  %v4241_v51 = vld [vmem:[#allocation5 + $0x1c4] ss:$16 sps:$4 sm:$0xff]   ;;  %v4244_v0 = vld [vmem:[#allocation5 + $0x1cc] ss:$16 sps:$4 sm:$0xff]  }
 0x46a   :  { %1849 = vmatpush1.bf16.msra.mxu0 %v4149_v52  ;;  %1890 = vmatpush1.bf16.msra.mxu1 %v4152_v24  ;;  %v4239_v52 = vld [vmem:[#allocation5 + $0x1c0] ss:$16 sps:$4 sm:$0xff]   ;;  %v4242_v24 = vld [vmem:[#allocation5 + $0x1c8] ss:$16 sps:$4 sm:$0xff]  }
 0x46b   :  { %2748 = vmatprep.subr.bf16.mxu0 %v4157_v53  ;;  %2830 = vmatprep.subr.bf16.mxu1 %v4160_v54  ;;  %v4247_v53 = vld [vmem:[#allocation5 + $0x1e4] ss:$16 sps:$4 sm:$0xff]   ;;  %v4250_v54 = vld [vmem:[#allocation5 + $0x1ec] ss:$16 sps:$4 sm:$0xff]  }
 0x46d   :  { %3589 = vmatmul.mubr.msk.bf16.vlgmr.msra.gmra.mrb[16].mxu0 %vm210_vm0, %v4771_v17  ;;  %3590 = vmatmul.mubr.msk.bf16.vlgmr.msra.gmra.mrb[16].mxu1 %vm210_vm0, %v4771_v17  ;;  %v4176_v17 = vld [vmem:[#allocation5 + $0x68] ss:$16 sps:$4 sm:$0xff]  }
 0x46e   :  { %2749 = vmatpush1.bf16.msra.mxu0 %v4155_v55  ;;  %2831 = vmatpush1.bf16.msra.mxu1 %v4158_v56  ;;  %v4245_v55 = vld [vmem:[#allocation5 + $0x1e0] ss:$16 sps:$4 sm:$0xff]   ;;  %v4248_v56 = vld [vmem:[#allocation5 + $0x1e8] ss:$16 sps:$4 sm:$0xff]  }
 0x46f   :  { %2750 = vmatprep.subr.bf16.mxu0 %v4163_v57  ;;  %2832 = vmatprep.subr.bf16.mxu1 %v4166_v26  ;;  %v4253_v57 = vld [vmem:[#allocation5 + $0x204] ss:$16 sps:$4 sm:$0xff]   ;;  %v4256_v26 = vld [vmem:[#allocation5 + $0x20c] ss:$16 sps:$4 sm:$0xff]  }
 0x472   :  { %2751 = vmatpush1.bf16.msra.mxu0 %v4161_v58  ;;  %2833 = vmatpush1.bf16.msra.mxu1 %v4164_v43 }
 0x473   :  { %2752 = vmatprep.subr.bf16.mxu0 %v4169_v59  ;;  %2834 = vmatprep.subr.bf16.mxu1 %v4172_v60 }
 0x476   :  { %2753 = vmatpush1.bf16.msra.mxu0 %v4167_v61  ;;  %2835 = vmatpush1.bf16.msra.mxu1 %v4170_v62 }
 0x477   :  { %2754 = vmatprep.subr.bf16.mxu0 %v4175_v63  ;;  %2836 = vmatprep.subr.bf16.mxu1 %v4178_v1 }
 0x47a   :  { %2755 = vmatpush1.bf16.msra.mxu0 %v4173_v2  ;;  %2837 = vmatpush1.bf16.msra.mxu1 %v4176_v17  ;;  %v1924_v2 = vld [vmem:[%s5211_s10] sm:$0xf]  ;;  %s4588_s10 = smov 96  }
 0x47b   :  { %2756 = vmatprep.subr.bf16.mxu0 %v4181_v3  ;;  %2838 = vmatprep.subr.bf16.mxu1 %v4184_v4  ;;  %v1929_v17 = vrot.slane %v1924_v2, %v4786_v25  ;;  %v1937_v3 = vrot.slane %v1924_v2, %v4808_v42 }
 0x47e   :  { %2757 = vmatpush1.bf16.msra.mxu0 %v4179_v5  ;;  %2839 = vmatpush1.bf16.msra.mxu1 %v4182_v6  ;;  %v1933_v6 = vrot.slane %v1924_v2, %v4794_v27 }
 0x47f   :  { %2758 = vmatprep.subr.bf16.mxu0 %v4187_v7  ;;  %2840 = vmatprep.subr.bf16.mxu1 %v4190_v8  ;;  %v1941_v7 = vrot.slane %v1924_v2, %v4801_v31  ;;  %v4302_v2 = vld [vmem:[#allocation5 + $0x308] ss:$16 sps:$4 sm:$0xff]  }
 0x482   :  { %2759 = vmatpush1.bf16.msra.mxu0 %v4185_v9  ;;  %2841 = vmatpush1.bf16.msra.mxu1 %v4188_v10 }
 0x483   :  { %2760 = vmatprep.subr.bf16.mxu0 %v4193_v11  ;;  %2842 = vmatprep.subr.bf16.mxu1 %v4196_v12 }
 0x486   :  { %2761 = vmatpush1.bf16.msra.mxu0 %v4191_v13  ;;  %2843 = vmatpush1.bf16.msra.mxu1 %v4194_v14 }
 0x487   :  { %2762 = vmatprep.subr.bf16.mxu0 %v4199_v15  ;;  %2844 = vmatprep.subr.bf16.mxu1 %v4202_v16 }
 0x48a   :  { %2763 = vmatpush1.bf16.msra.mxu0 %v4197_v18  ;;  %2845 = vmatpush1.bf16.msra.mxu1 %v4200_v19 }
 0x48b   :  { %2764 = vmatprep.subr.bf16.mxu0 %v4205_v20  ;;  %2846 = vmatprep.subr.bf16.mxu1 %v4208_v21 }
 0x48e   :  { %2765 = vmatpush1.bf16.msra.mxu0 %v4203_v22  ;;  %2847 = vmatpush1.bf16.msra.mxu1 %v4206_v23 }
 0x48f   :  { %2766 = vmatprep.subr.bf16.mxu0 %v4211_v28  ;;  %2848 = vmatprep.subr.bf16.mxu1 %v4214_v29 }
 0x492   :  { %2767 = vmatpush1.bf16.msra.mxu0 %v4209_v30  ;;  %2849 = vmatpush1.bf16.msra.mxu1 %v4212_v32  ;;  %v4251_v32 = vld [vmem:[#allocation5 + $0x200] ss:$16 sps:$4 sm:$0xff]  }
 0x493   :  { %2768 = vmatprep.subr.bf16.mxu0 %v4217_v33  ;;  %2850 = vmatprep.subr.bf16.mxu1 %v4220_v34  ;;  %v4254_v33 = vld [vmem:[#allocation5 + $0x208] ss:$16 sps:$4 sm:$0xff]  }
 0x496   :  { %2769 = vmatpush1.bf16.msra.mxu0 %v4215_v35  ;;  %2851 = vmatpush1.bf16.msra.mxu1 %v4218_v36  ;;  %v4259_v35 = vld [vmem:[#allocation5 + $0x224] ss:$16 sps:$4 sm:$0xff]   ;;  %v4262_v36 = vld [vmem:[#allocation5 + $0x22c] ss:$16 sps:$4 sm:$0xff]  }
 0x497   :  { %2770 = vmatprep.subr.bf16.mxu0 %v4223_v38  ;;  %2852 = vmatprep.subr.bf16.mxu1 %v4226_v40  ;;  %v4257_v38 = vld [vmem:[#allocation5 + $0x220] ss:$16 sps:$4 sm:$0xff]   ;;  %v4265_v40 = vld [vmem:[#allocation5 + $0x244] ss:$16 sps:$4 sm:$0xff]  }
 0x49a   :  { %2771 = vmatpush1.bf16.msra.mxu0 %v4221_v37  ;;  %2853 = vmatpush1.bf16.msra.mxu1 %v4224_v39  ;;  %v4260_v39 = vld [vmem:[#allocation5 + $0x228] ss:$16 sps:$4 sm:$0xff]  }
 0x49b   :  { %2772 = vmatprep.subr.bf16.mxu0 %v4229_v41  ;;  %2854 = vmatprep.subr.bf16.mxu1 %v4232_v44  ;;  %v4268_v41 = vld [vmem:[#allocation5 + $0x24c] ss:$16 sps:$4 sm:$0xff]   ;;  %v4263_v44 = vld [vmem:[#allocation5 + $0x240] ss:$16 sps:$4 sm:$0xff]  }
 0x49e   :  { %2773 = vmatpush1.bf16.msra.mxu0 %v4227_v45  ;;  %2855 = vmatpush1.bf16.msra.mxu1 %v4230_v46  ;;  %v4266_v45 = vld [vmem:[#allocation5 + $0x248] ss:$16 sps:$4 sm:$0xff]   ;;  %v4271_v46 = vld [vmem:[#allocation5 + $0x264] ss:$16 sps:$4 sm:$0xff]  }
 0x49f   :  { %2774 = vmatprep.subr.bf16.mxu0 %v4235_v47  ;;  %2856 = vmatprep.subr.bf16.mxu1 %v4238_v48  ;;  %v4274_v47 = vld [vmem:[#allocation5 + $0x26c] ss:$16 sps:$4 sm:$0xff]   ;;  %v4269_v48 = vld [vmem:[#allocation5 + $0x260] ss:$16 sps:$4 sm:$0xff]  }
 0x4a2   :  { %2775 = vmatpush1.bf16.msra.mxu0 %v4233_v49  ;;  %2857 = vmatpush1.bf16.msra.mxu1 %v4236_v50  ;;  %v4272_v49 = vld [vmem:[#allocation5 + $0x268] ss:$16 sps:$4 sm:$0xff]   ;;  %v4277_v50 = vld [vmem:[#allocation5 + $0x284] ss:$16 sps:$4 sm:$0xff]  }
 0x4a3   :  { %2776 = vmatprep.subr.bf16.mxu0 %v4241_v51  ;;  %2858 = vmatprep.subr.bf16.mxu1 %v4244_v0  ;;  %v4280_v51 = vld [vmem:[#allocation5 + $0x28c] ss:$16 sps:$4 sm:$0xff]   ;;  %v4275_v0 = vld [vmem:[#allocation5 + $0x280] ss:$16 sps:$4 sm:$0xff]  }
 0x4a6   :  { %2777 = vmatpush1.bf16.msra.mxu0 %v4239_v52  ;;  %2859 = vmatpush1.bf16.msra.mxu1 %v4242_v24  ;;  %v4278_v52 = vld [vmem:[#allocation5 + $0x288] ss:$16 sps:$4 sm:$0xff]   ;;  %v4283_v24 = vld [vmem:[#allocation5 + $0x2a4] ss:$16 sps:$4 sm:$0xff]  }
 0x4a7   :  { %2778 = vmatprep.subr.bf16.mxu0 %v4247_v53  ;;  %2860 = vmatprep.subr.bf16.mxu1 %v4250_v54  ;;  %v4286_v53 = vld [vmem:[#allocation5 + $0x2ac] ss:$16 sps:$4 sm:$0xff]   ;;  %v4281_v54 = vld [vmem:[#allocation5 + $0x2a0] ss:$16 sps:$4 sm:$0xff]  }
 0x4aa   :  { %2779 = vmatpush1.bf16.msra.mxu0 %v4245_v55  ;;  %2861 = vmatpush1.bf16.msra.mxu1 %v4248_v56  ;;  %v4284_v55 = vld [vmem:[#allocation5 + $0x2a8] ss:$16 sps:$4 sm:$0xff]   ;;  %v4289_v56 = vld [vmem:[#allocation5 + $0x2c4] ss:$16 sps:$4 sm:$0xff]  }
 0x4ab   :  { %2789 = vmatprep.subr.bf16.mxu0 %v4253_v57  ;;  %2871 = vmatprep.subr.bf16.mxu1 %v4256_v26  ;;  %v4292_v57 = vld [vmem:[#allocation5 + $0x2cc] ss:$16 sps:$4 sm:$0xff]   ;;  %v4287_v26 = vld [vmem:[#allocation5 + $0x2c0] ss:$16 sps:$4 sm:$0xff]  }
 0x530   :  { %v1714_v58 = vpop.f32.mrb[12].mxu0  ;;  %v1755_v43 = vpop.f32.mrb[12].mxu1 }
 0x531   :  { %v1716_v59 = vpop.f32.mrb[13].mxu0  ;;  %v1757_v60 = vpop.f32.mrb[13].mxu1 }
 0x532   :  { %v1718_v61 = vpop.f32.mrb[14].mxu0  ;;  %v1759_v62 = vpop.f32.mrb[14].mxu1 }
 0x533   :  { %v1719_v63 = vpop.f32.mrb[15].mxu0  ;;  %v1760_v1 = vpop.f32.mrb[15].mxu1  ;;  %v4296_v61 = vld [vmem:[#allocation5 + $0x2e8] ss:$16 sps:$4 sm:$0xff]   ;;  %v4301_v62 = vld [vmem:[#allocation5 + $0x304] ss:$16 sps:$4 sm:$0xff]  }
 0x534   :  { %v4304_v63 = vld [vmem:[#allocation5 + $0x30c] ss:$16 sps:$4 sm:$0xff]   ;;  %v4299_v1 = vld [vmem:[#allocation5 + $0x300] ss:$16 sps:$4 sm:$0xff]  }
 0x540   :  { %v1876_v4 = vpop.f32.mrb[16].mxu0  ;;  %v1917_v5 = vpop.f32.mrb[16].mxu1 }
 0x541   :  { %v1877_v8 = vadd.f32 %v1876_v4, %v1714_v58  ;;  %v1918_v9 = vadd.f32 %v1917_v5, %v1755_v43  ;;  %v1878_v10 = vpop.f32.mrb[17].mxu0  ;;  %v1919_v11 = vpop.f32.mrb[17].mxu1  ;;  %v4290_v58 = vld [vmem:[#allocation5 + $0x2c8] ss:$16 sps:$4 sm:$0xff]   ;;  %v4295_v43 = vld [vmem:[#allocation5 + $0x2e4] ss:$16 sps:$4 sm:$0xff]  }
 0x542   :  { %v1879_v12 = vadd.f32 %v1878_v10, %v1716_v59  ;;  %v1920_v13 = vadd.f32 %v1919_v11, %v1757_v60  ;;  %v1880_v14 = vpop.f32.mrb[18].mxu0  ;;  %v1921_v15 = vpop.f32.mrb[18].mxu1  ;;  %v4298_v59 = vld [vmem:[#allocation5 + $0x2ec] ss:$16 sps:$4 sm:$0xff]   ;;  %v4293_v60 = vld [vmem:[#allocation5 + $0x2e0] ss:$16 sps:$4 sm:$0xff]  }
 0x543   :  { %v1946_v16 = vadd.f32 %v1929_v17, %v1877_v8  ;;  %v5006_v18 = vadd.f32 %v1937_v3, %v1918_v9  ;;  %v1881_v19 = vpop.f32.mrb[19].mxu0  ;;  %v1922_v20 = vpop.f32.mrb[19].mxu1  ;;  %v4307_v17 = vld [vmem:[#allocation5 + $0x324] ss:$16 sps:$4 sm:$0xff]   ;;  %v4310_v3 = vld [vmem:[#allocation5 + $0x32c] ss:$16 sps:$4 sm:$0xff]  }
 0x544   :  { %v1947_v21 = vadd.f32 %v1933_v6, %v1879_v12  ;;  %v1949_v22 = vadd.f32 %v1941_v7, %v1920_v13  ;;  %v4305_v4 = vld [vmem:[#allocation5 + $0x320] ss:$16 sps:$4 sm:$0xff]   ;;  %v4308_v5 = vld [vmem:[#allocation5 + $0x328] ss:$16 sps:$4 sm:$0xff]   ;;  %v4313_v6 = vld [vmem:[#allocation5 + $0x344] ss:$16 sps:$4 sm:$0xff]  }
 0x545   :  { %v1950_v23 = vmax.f32 %v1946_v16, 0.0  ;;  %v4316_v7 = vld [vmem:[#allocation5 + $0x34c] ss:$16 sps:$4 sm:$0xff]   ;;  %v4311_v8 = vld [vmem:[#allocation5 + $0x340] ss:$16 sps:$4 sm:$0xff]  }
 0x546   :  { %v1951_v28 = vmax.f32 %v1947_v21, 0.0  ;;  %v1953_v29 = vmax.f32 %v1949_v22, 0.0  ;;  %v4314_v9 = vld [vmem:[#allocation5 + $0x348] ss:$16 sps:$4 sm:$0xff]   ;;  %v4319_v10 = vld [vmem:[#allocation5 + $0x364] ss:$16 sps:$4 sm:$0xff]  }
 0x547   :  { %v1954_v34 = vpack.c.bf16 %v1950_v23, %v1950_v23  ;;  %v4322_v11 = vld [vmem:[#allocation5 + $0x36c] ss:$16 sps:$4 sm:$0xff]   ;;  %v4317_v12 = vld [vmem:[#allocation5 + $0x360] ss:$16 sps:$4 sm:$0xff]   ;;  %v4320_v13 = vld [vmem:[#allocation5 + $0x368] ss:$16 sps:$4 sm:$0xff]  }
 0x548   :  { %v1955_v30 = vpack.c.bf16 %v1951_v28, %v1951_v28  ;;  %v1957_v37 = vpack.c.bf16 %v1953_v29, %v1953_v29  ;;  %v4325_v14 = vld [vmem:[#allocation5 + $0x384] ss:$16 sps:$4 sm:$0xff]   ;;  %v4328_v15 = vld [vmem:[#allocation5 + $0x38c] ss:$16 sps:$4 sm:$0xff]   ;;  %v4323_v16 = vld [vmem:[#allocation5 + $0x380] ss:$16 sps:$4 sm:$0xff]  }
 0x549   :  { %v4326_v19 = vld [vmem:[#allocation5 + $0x388] ss:$16 sps:$4 sm:$0xff]   ;;  %v4331_v20 = vld [vmem:[#allocation5 + $0x3a4] ss:$16 sps:$4 sm:$0xff]   ;;  %v4334_v21 = vld [vmem:[#allocation5 + $0x3ac] ss:$16 sps:$4 sm:$0xff]  }
 0x54a   :  { %2780 = vmatprep.mubr.bf16.mxu0 %v1955_v30  ;;  %2862 = vmatprep.mubr.bf16.mxu1 %v1955_v30  ;;  %v4329_v22 = vld [vmem:[#allocation5 + $0x3a0] ss:$16 sps:$4 sm:$0xff]   ;;  %v4332_v23 = vld [vmem:[#allocation5 + $0x3a8] ss:$16 sps:$4 sm:$0xff]   ;;  %v4337_v28 = vld [vmem:[#allocation5 + $0x3c4] ss:$16 sps:$4 sm:$0xff]  }
 0x54b   :  { %2781 = vmatmul.mubr.bf16.vlgmr.msra.gmra.mrb[20].mxu0 %v1954_v34  ;;  %2863 = vmatmul.mubr.bf16.vlgmr.msra.gmra.mrb[20].mxu1 %v1954_v34  ;;  %v4340_v29 = vld [vmem:[#allocation5 + $0x3cc] ss:$16 sps:$4 sm:$0xff]   ;;  %v4335_v30 = vld [vmem:[#allocation5 + $0x3c0] ss:$16 sps:$4 sm:$0xff]  }
 0x54c   :  { %2790 = vmatpush1.bf16.msra.mxu0 %v4251_v32  ;;  %2872 = vmatpush1.bf16.msra.mxu1 %v4254_v33  ;;  %v4338_v32 = vld [vmem:[#allocation5 + $0x3c8] ss:$16 sps:$4 sm:$0xff]   ;;  %v4343_v33 = vld [vmem:[#allocation5 + $0x3e4] ss:$16 sps:$4 sm:$0xff]   ;;  %v4346_v34 = vld [vmem:[#allocation5 + $0x3ec] ss:$16 sps:$4 sm:$0xff]  }
 0x54d   :  { %2821 = vmatprep.mubr.bf16.mxu0 %v1957_v37  ;;  %2903 = vmatprep.mubr.bf16.mxu1 %v1957_v37  ;;  %v1952_v37 = vmax.f32 %v5006_v18, 0.0  ;;  %v4350_v18 = vld [vmem:[%s5214_s13 + $0x80] sm:$0xff]  }
 0x54e   :  { %2791 = vmatprep.subr.bf16.mxu0 %v4259_v35  ;;  %2873 = vmatprep.subr.bf16.mxu1 %v4262_v36  ;;  %v4341_v35 = vld [vmem:[#allocation5 + $0x3e0] ss:$16 sps:$4 sm:$0xff]   ;;  %v4344_v36 = vld [vmem:[#allocation5 + $0x3e8] ss:$16 sps:$4 sm:$0xff]  }
 0x550   :  { %2792 = vmatpush1.bf16.msra.mxu0 %v4257_v38  ;;  %2874 = vmatpush1.bf16.msra.mxu1 %v4260_v39  ;;  %v4347_v38 = vld [vmem:[%s5214_s13 + $0x40] sm:$0xff]  }
 0x551   :  { %2793 = vmatprep.subr.bf16.mxu0 %v4265_v40  ;;  %2875 = vmatprep.subr.bf16.mxu1 %v4268_v41  ;;  %v4348_v39 = vld [vmem:[%s5214_s13 + $0xc0] sm:$0xff]   ;;  %v1956_v41 = vpack.c.bf16 %v1952_v37, %v1952_v37 }
 0x552   :  { %v4349_v40 = vld [vmem:[%s5214_s13] sm:$0xff]  }
 0x554   :  { %2794 = vmatpush1.bf16.msra.mxu0 %v4263_v44  ;;  %2876 = vmatpush1.bf16.msra.mxu1 %v4266_v45  ;;  %v4351_v44 = vld [vmem:[%s5214_s13 + $0x48] sm:$0xff]  }
 0x555   :  { %2795 = vmatprep.subr.bf16.mxu0 %v4271_v46  ;;  %2877 = vmatprep.subr.bf16.mxu1 %v4274_v47  ;;  %v4352_v45 = vld [vmem:[%s5214_s13 + $0xc8] sm:$0xff]  }
 0x556   :  { %v4353_v46 = vld [vmem:[%s5214_s13 + $0x8] sm:$0xff]  }
 0x557   :  { %v4354_v47 = vld [vmem:[%s5214_s13 + $0x88] sm:$0xff]  }
 0x558   :  { %2796 = vmatpush1.bf16.msra.mxu0 %v4269_v48  ;;  %2878 = vmatpush1.bf16.msra.mxu1 %v4272_v49  ;;  %v4355_v48 = vld [vmem:[%s5214_s13 + $0x50] sm:$0xff]  }
 0x559   :  { %2797 = vmatprep.subr.bf16.mxu0 %v4277_v50  ;;  %2879 = vmatprep.subr.bf16.mxu1 %v4280_v51  ;;  %v4356_v49 = vld [vmem:[%s5214_s13 + $0xd0] sm:$0xff]  }
 0x55a   :  { %v4357_v50 = vld [vmem:[%s5214_s13 + $0x10] sm:$0xff]  }
 0x55b   :  { %v4358_v51 = vld [vmem:[%s5214_s13 + $0x90] sm:$0xff]  }
 0x55c   :  { %2798 = vmatpush1.bf16.msra.mxu0 %v4275_v0  ;;  %2880 = vmatpush1.bf16.msra.mxu1 %v4278_v52  ;;  %v4359_v0 = vld [vmem:[%s5214_s13 + $0x58] sm:$0xff]  }
 0x55d   :  { %2799 = vmatprep.subr.bf16.mxu0 %v4283_v24  ;;  %2881 = vmatprep.subr.bf16.mxu1 %v4286_v53  ;;  %v4360_v52 = vld [vmem:[%s5214_s13 + $0xd8] sm:$0xff]  }
 0x55e   :  { %v4361_v24 = vld [vmem:[%s5214_s13 + $0x18] sm:$0xff]  }
 0x55f   :  { %v4362_v53 = vld [vmem:[%s5214_s13 + $0x98] sm:$0xff]  }
 0x560   :  { %2800 = vmatpush1.bf16.msra.mxu0 %v4281_v54  ;;  %2882 = vmatpush1.bf16.msra.mxu1 %v4284_v55  ;;  %v4363_v54 = vld [vmem:[%s5214_s13 + $0x60] sm:$0xff]  }
 0x561   :  { %2801 = vmatprep.subr.bf16.mxu0 %v4289_v56  ;;  %2883 = vmatprep.subr.bf16.mxu1 %v4292_v57  ;;  %v4364_v55 = vld [vmem:[%s5214_s13 + $0xe0] sm:$0xff]  }
 0x562   :  { %v4365_v56 = vld [vmem:[%s5214_s13 + $0x20] sm:$0xff]  }
 0x563   :  { %v4366_v57 = vld [vmem:[%s5214_s13 + $0xa0] sm:$0xff]  }
 0x564   :  { %2802 = vmatpush1.bf16.msra.mxu0 %v4287_v26  ;;  %2884 = vmatpush1.bf16.msra.mxu1 %v4290_v58  ;;  %v4367_v26 = vld [vmem:[%s5214_s13 + $0x68] sm:$0xff]  }
 0x565   :  { %2803 = vmatprep.subr.bf16.mxu0 %v4295_v43  ;;  %2885 = vmatprep.subr.bf16.mxu1 %v4298_v59  ;;  %v4368_v58 = vld [vmem:[%s5214_s13 + $0xe8] sm:$0xff]  }
 0x566   :  { %v4369_v43 = vld [vmem:[%s5214_s13 + $0x28] sm:$0xff]  }
 0x567   :  { %v4370_v59 = vld [vmem:[%s5214_s13 + $0xa8] sm:$0xff]  }
 0x568   :  { %2804 = vmatpush1.bf16.msra.mxu0 %v4293_v60  ;;  %2886 = vmatpush1.bf16.msra.mxu1 %v4296_v61  ;;  %v4371_v60 = vld [vmem:[%s5214_s13 + $0x70] sm:$0xff]  }
 0x569   :  { %2805 = vmatprep.subr.bf16.mxu0 %v4301_v62  ;;  %2887 = vmatprep.subr.bf16.mxu1 %v4304_v63  ;;  %v4372_v61 = vld [vmem:[%s5214_s13 + $0xf0] sm:$0xff]  }
 0x56a   :  { %v4373_v62 = vld [vmem:[%s5214_s13 + $0x30] sm:$0xff]  }
 0x56b   :  { %v4374_v63 = vld [vmem:[%s5214_s13 + $0xb0] sm:$0xff]  }
 0x56c   :  { %2806 = vmatpush1.bf16.msra.mxu0 %v4299_v1  ;;  %2888 = vmatpush1.bf16.msra.mxu1 %v4302_v2  ;;  %v4375_v1 = vld [vmem:[%s5214_s13 + $0x78] sm:$0xff]  }
 0x56d   :  { %2807 = vmatprep.subr.bf16.mxu0 %v4307_v17  ;;  %2889 = vmatprep.subr.bf16.mxu1 %v4310_v3  ;;  %v4376_v2 = vld [vmem:[%s5214_s13 + $0xf8] sm:$0xff]  }
 0x56e   :  { %v4377_v17 = vld [vmem:[%s5214_s13 + $0x38] sm:$0xff]  }
 0x56f   :  { %v4378_v3 = vld [vmem:[%s5214_s13 + $0xb8] sm:$0xff]  }
 0x570   :  { %2808 = vmatpush1.bf16.msra.mxu0 %v4305_v4  ;;  %2890 = vmatpush1.bf16.msra.mxu1 %v4308_v5  ;;  %v2086_v4 = vld [vmem:[%s5213_s12] sm:$0xf] }
 0x571   :  { %2809 = vmatprep.subr.bf16.mxu0 %v4313_v6  ;;  %2891 = vmatprep.subr.bf16.mxu1 %v4316_v7  ;;  %v2091_v5 = vrot.slane %v2086_v4, %v4786_v25  ;;  %v2099_v6 = vrot.slane %v2086_v4, %v4808_v42  ;;  %v2095_v7 = vrot.slane %v2086_v4, %v4794_v27 }
 0x574   :  { %2810 = vmatpush1.bf16.msra.mxu0 %v4311_v8  ;;  %2892 = vmatpush1.bf16.msra.mxu1 %v4314_v9  ;;  %v2103_v8 = vrot.slane %v2086_v4, %v4801_v31 }
 0x575   :  { %2811 = vmatprep.subr.bf16.mxu0 %v4319_v10  ;;  %2893 = vmatprep.subr.bf16.mxu1 %v4322_v11 }
 0x578   :  { %2812 = vmatpush1.bf16.msra.mxu0 %v4317_v12  ;;  %2894 = vmatpush1.bf16.msra.mxu1 %v4320_v13 }
 0x579   :  { %2813 = vmatprep.subr.bf16.mxu0 %v4325_v14  ;;  %2895 = vmatprep.subr.bf16.mxu1 %v4328_v15 }
 0x57c   :  { %2814 = vmatpush1.bf16.msra.mxu0 %v4323_v16  ;;  %2896 = vmatpush1.bf16.msra.mxu1 %v4326_v19 }
 0x57d   :  { %2815 = vmatprep.subr.bf16.mxu0 %v4331_v20  ;;  %2897 = vmatprep.subr.bf16.mxu1 %v4334_v21 }
 0x580   :  { %2816 = vmatpush1.bf16.msra.mxu0 %v4329_v22  ;;  %2898 = vmatpush1.bf16.msra.mxu1 %v4332_v23 }
 0x581   :  { %2817 = vmatprep.subr.bf16.mxu0 %v4337_v28  ;;  %2899 = vmatprep.subr.bf16.mxu1 %v4340_v29 }
 0x584   :  { %2818 = vmatpush1.bf16.msra.mxu0 %v4335_v30  ;;  %2900 = vmatpush1.bf16.msra.mxu1 %v4338_v32 }
 0x585   :  { %2819 = vmatprep.subr.bf16.mxu0 %v4343_v33  ;;  %2901 = vmatprep.subr.bf16.mxu1 %v4346_v34  ;;  %v3719_v34 = vld [vmem:[%s5215_s14] ss:$0 sm:$0xff]  ;;  %s4587_s14 = smov 112  }
 0x588   :  { %2820 = vmatpush1.bf16.msra.mxu0 %v4341_v35  ;;  %2902 = vmatpush1.bf16.msra.mxu1 %v4344_v36 }
 0x589   :  { %3796 = vmatprep.subr.bf16.mxu0 %v4347_v38  ;;  %3818 = vmatprep.subr.bf16.mxu1 %v4348_v39 }
 0x58b   :  { %2822 = vmatmul.mubr.bf16.vlgmr.msra.gmra.mrb[20].mxu0 %v1956_v41  ;;  %2904 = vmatmul.mubr.bf16.vlgmr.msra.gmra.mrb[20].mxu1 %v1956_v41 }
 0x58c   :  { %3797 = vmatpush3.bf16.msra.mxu0 %v4349_v40  ;;  %3819 = vmatpush3.bf16.msra.mxu1 %v4350_v18 }
 0x58d   :  { %3798 = vmatprep.subr.bf16.mxu0 %v4351_v44  ;;  %3820 = vmatprep.subr.bf16.mxu1 %v4352_v45 }
 0x590   :  { %3799 = vmatpush3.bf16.msra.mxu0 %v4353_v46  ;;  %3821 = vmatpush3.bf16.msra.mxu1 %v4354_v47 }
 0x591   :  { %3800 = vmatprep.subr.bf16.mxu0 %v4355_v48  ;;  %3822 = vmatprep.subr.bf16.mxu1 %v4356_v49 }
 0x594   :  { %3801 = vmatpush3.bf16.msra.mxu0 %v4357_v50  ;;  %3823 = vmatpush3.bf16.msra.mxu1 %v4358_v51 }
 0x595   :  { %3802 = vmatprep.subr.bf16.mxu0 %v4359_v0  ;;  %3824 = vmatprep.subr.bf16.mxu1 %v4360_v52 }
 0x598   :  { %3803 = vmatpush3.bf16.msra.mxu0 %v4361_v24  ;;  %3825 = vmatpush3.bf16.msra.mxu1 %v4362_v53 }
 0x599   :  { %3804 = vmatprep.subr.bf16.mxu0 %v4363_v54  ;;  %3826 = vmatprep.subr.bf16.mxu1 %v4364_v55 }
 0x59c   :  { %3805 = vmatpush3.bf16.msra.mxu0 %v4365_v56  ;;  %3827 = vmatpush3.bf16.msra.mxu1 %v4366_v57 }
 0x59d   :  { %3806 = vmatprep.subr.bf16.mxu0 %v4367_v26  ;;  %3828 = vmatprep.subr.bf16.mxu1 %v4368_v58 }
 0x5a0   :  { %3807 = vmatpush3.bf16.msra.mxu0 %v4369_v43  ;;  %3829 = vmatpush3.bf16.msra.mxu1 %v4370_v59 }
 0x5a1   :  { %3808 = vmatprep.subr.bf16.mxu0 %v4371_v60  ;;  %3830 = vmatprep.subr.bf16.mxu1 %v4372_v61 }
 0x5a4   :  { %3809 = vmatpush3.bf16.msra.mxu0 %v4373_v62  ;;  %3831 = vmatpush3.bf16.msra.mxu1 %v4374_v63 }
 0x5a5   :  { %3810 = vmatprep.subr.bf16.mxu0 %v4375_v1  ;;  %3832 = vmatprep.subr.bf16.mxu1 %v4376_v2 }
 0x5a8   :  { %3811 = vmatpush3.bf16.msra.mxu0 %v4377_v17  ;;  %3833 = vmatpush3.bf16.msra.mxu1 %v4378_v3 }
 0x65e   :  { %v2823_v9 = vpop.f32.mrb[20].mxu0  ;;  %v2905_v10 = vpop.f32.mrb[20].mxu1 }
 0x65f   :  { %v3844_v11 = vadd.f32 %v2823_v9, %v2091_v5  ;;  %v3846_v12 = vadd.f32 %v2905_v10, %v2099_v6  ;;  %v2825_v13 = vpop.f32.mrb[21].mxu0  ;;  %v2907_v14 = vpop.f32.mrb[21].mxu1 }
 0x660   :  { %v3845_v15 = vadd.f32 %v2825_v13, %v2095_v7  ;;  %v3847_v16 = vadd.f32 %v2907_v14, %v2103_v8  ;;  %v2827_v19 = vpop.f32.mrb[22].mxu0  ;;  %v2909_v20 = vpop.f32.mrb[22].mxu1 }
 0x661   :  { %v2912_v21 = vmax.f32 %v3844_v11, 0.0  ;;  %v2914_v22 = vmax.f32 %v3846_v12, 0.0  ;;  %v2828_v23 = vpop.f32.mrb[23].mxu0  ;;  %v2910_v25 = vpop.f32.mrb[23].mxu1 }
 0x662   :  { %v2913_v28 = vmax.f32 %v3845_v15, 0.0  ;;  %v2915_v42 = vmax.f32 %v3847_v16, 0.0 }
 0x663   :  { %v2916_v30 = vpack.c.bf16 %v2912_v21, %v2912_v21  ;;  %v2918_v31 = vpack.c.bf16 %v2914_v22, %v2914_v22 }
 0x664   :  { %v2917_v29 = vpack.c.bf16 %v2913_v28, %v2913_v28  ;;  %v2919_v27 = vpack.c.bf16 %v2915_v42, %v2915_v42 }
 0x666   :  { %3215 = vmatprep.mubr.bf16.mxu0 %v2917_v29  ;;  %3255 = vmatprep.mubr.bf16.mxu1 %v2919_v27 }
 0x667   :  { %3216 = vmatmul.mubr.bf16.vlgmr.msra.gmra.mrb[24].mxu0 %v2916_v30  ;;  %3256 = vmatmul.mubr.bf16.vlgmr.msra.gmra.mrb[24].mxu1 %v2918_v31 }
 0x73a   :  { %v3812_v32 = vpop.f32.mrb[24].mxu0  ;;  %v3834_v33 = vpop.f32.mrb[24].mxu1 }
 0x73b   :  { %v3813_v35 = vpop.f32.mrb[25].mxu0  ;;  %v3835_v36 = vpop.f32.mrb[25].mxu1 }
 0x73c   :  { %v3814_v37 = vadd.f32 %v3813_v35, %v3812_v32  ;;  %v3836_v38 = vadd.f32 %v3835_v36, %v3834_v33  ;;  %v3815_v39 = vpop.f32.mrb[26].mxu0  ;;  %v3837_v40 = vpop.f32.mrb[26].mxu1 }
 0x73d   :  { %v3816_v18 = vpop.f32.mrb[27].mxu0  ;;  %v3838_v41 = vpop.f32.mrb[27].mxu1 }
 0x73e   :  { %v3218_v44 = vadd.f32 %v3814_v37, %v3719_v34 }
 0x740   :  { %v5115_v45 = vadd.f32 %v3836_v38, %v3218_v44 }
 0x742   :  { %v3264_v46 = vand.u32 2147483647, %v5115_v45  ;;  %3279 = vst.msk [vmem:[#allocation11] sm:$0xff] %vm3278_vm2, %v5115_v45  ;;  %v3263_v55 = vmax.f32 %v5115_v45, 0.0 }
 0x744   :  { %v3265_v47 = vsub.f32 0.0, %v3264_v46 }
 0x746   :  { %v3266_v48 = vmul.f32 1.442695, %v3265_v47 }
 0x748   :  { %4387 = vpow2.f32 %v3266_v48 }
 0x752   :  { %v4388_v49 = vpop.eup %4387 }
 0x753   :  { %v3268_v50 = vadd.f32 1.0, %v4388_v49  ;;  %v3271_v51 = vmul.f32 -0.5, %v4388_v49  ;;  %v3274_v52 = vand.u32 2147483647, %v4388_v49 }
 0x755   :  { %4389 = vlog2.f32 %v3268_v50  ;;  %v3272_v0 = vadd.f32 1.0, %v3271_v51  ;;  %vm3275_vm3 = vcmp.lt.f32.partialorder %v3274_v52, 0.0004427343 }
 0x757   :  { %v3273_v54 = vmul.f32 %v4388_v49, %v3272_v0 }
 0x75f   :  { %v4390_v24 = vpop.eup %4389 }
 0x760   :  { %v3270_v53 = vmul.f32 0.6931472, %v4390_v24 }
 0x762   :  { %v3276_v56 = vsel %vm3275_vm3, %v3273_v54, %v3270_v53 }
 0x763   :  { %v3277_v57 = vadd.f32 %v3276_v56, %v3263_v55 }
 0x765   :  { %v3285_v26 = vadd.f32 1e-10, %v3277_v57 }
 0x767   :  { %4391 = vrsqrt.f32 %v3285_v26  ;;  %vm3288_vm4 = vcmp.eq.f32.partialorder %v3285_v26, inf  ;;  %v3291_v59 = vand.u32 2147483648, %v3285_v26  ;;  %vm3290_vm5 = vcmp.eq.f32.partialorder %v3285_v26, 0.0 }
 0x771   :  { %v4392_v58 = vpop.eup %4391 }
 0x772   :  { %v3287_v43 = vmul.f32 %v4392_v58, %v3285_v26 }
 0x774   :  { %v3289_v60 = vsel %vm3288_vm4, %v3285_v26, %v3287_v43 }
 0x775   :  { %v3292_v61 = vsel %vm3290_vm5, %v3291_v59, %v3289_v60 }
 0x776   :  { %3294 = vrot.lane.b32.xlu1 %v3292_v61, %s4587_s14 }
 0x77a   :  { %3281 = vrot.lane.b32.xlu1 %v3277_v57, %s4588_s10 }
 0x77b   :  { %4449 = shalt.err (!%p4446_p6)
}
 0x77c   :  { %s4450_s4 = scalar_lea.hbm %s5217_s16, 128 }
 0x77d   :  { %p4451_p7 = scmp.ne.s32.totalorder %s5217_s16, %s4450_s4  ;;  %p4454_p8 = scmp.lt.u32.totalorder %s4450_s4, %s5217_s16 }
 0x77f   :  { %p4456_p9 = pnand %p4454_p8, %p4451_p7 }
 0x781   :  { %4459 = shalt.err (!%p4456_p9)
}
 0x782   :  { %3323 = dma.vmem_to_hbm [thread:$0]  %s3321_s30, 128, %s5217_s16, [#allocation9]  }
 0x783   :  { %s4460_s1 = scalar_lea.vmem %s3341_s3, 128  ;;  %p4465_p11 = scmp.lt.s32.totalorder %s3341_s3, %s3341_s3 }
 0x784   :  { %p4461_p10 = scmp.ne.s32.totalorder %s3341_s3, %s4460_s1  ;;  %p4466_p12 = scmp.lt.s32.totalorder %s4460_s1, %s4460_s1 }
 0x786   :  { %p4467_p13 = por %p4466_p12, %p4465_p11 }
 0x788   :  { %p4468_p0 = pnand %p4467_p13, %p4461_p10 }
 0x78a   :  { %4471 = shalt.err (!%p4468_p0)
}
 0x78b   :  { %s4472_s24 = scalar_lea.hbm %s5219_s18, 128 }
 0x78c   :  { %p4473_p1 = scmp.ne.s32.totalorder %s5219_s18, %s4472_s24  ;;  %p4476_p2 = scmp.lt.u32.totalorder %s4472_s24, %s5219_s18 }
 0x78e   :  { %p4478_p3 = pnand %p4476_p2, %p4473_p1 }
 0x790   :  { %4481 = shalt.err (!%p4478_p3)
}
 0x791   :  { %3343 = dma.vmem_to_hbm [thread:$0]  %s3341_s3, 128, %s5219_s18, [#allocation12]  }
 0x792   :  { %s4591_s10 = smov [#allocation7]   ;;  %s4592_s30 = smov [#allocation10]  }
 0x793   :  { %s3310_s29 = sshll.u32 %s4591_s10, 4  ;;  %s3330_s23 = sshll.u32 %s4592_s30, 4  ;;  %s3311_s29 = int_to_ptr.vmem [resolvable:$true] %s3310_s29  ;;  %s3331_s23 = int_to_ptr.vmem [resolvable:$true] %s3330_s23 }
 0x794   :  { %s4482_s26 = scalar_lea.vmem %s3311_s29, 128  ;;  %p4487_p5 = scmp.lt.s32.totalorder %s3311_s29, %s3311_s29 }
 0x795   :  { %p4483_p4 = scmp.ne.s32.totalorder %s3311_s29, %s4482_s26  ;;  %p4488_p6 = scmp.lt.s32.totalorder %s4482_s26, %s4482_s26 }
 0x797   :  { %p4489_p7 = por %p4488_p6, %p4487_p5 }
 0x799   :  { %p4490_p8 = pnand %p4489_p7, %p4483_p4 }
 0x79b   :  { %4493 = shalt.err (!%p4490_p8)
}
 0x79c   :  { %s4494_s4 = scalar_lea.hbm %s5216_s15, 128 }
 0x79d   :  { %p4495_p9 = scmp.ne.s32.totalorder %s5216_s15, %s4494_s4  ;;  %p4498_p10 = scmp.lt.u32.totalorder %s4494_s4, %s5216_s15 }
 0x79f   :  { %p4500_p11 = pnand %p4498_p10, %p4495_p9 }
 0x7a1   :  { %4503 = shalt.err (!%p4500_p11)
}
 0x7a2   :  { %3313 = dma.vmem_to_hbm [thread:$0]  %s3311_s29, 128, %s5216_s15, [#allocation4]  }
 0x7a3   :  { %s4504_s21 = scalar_lea.vmem %s3331_s23, 128  ;;  %p4509_p13 = scmp.lt.s32.totalorder %s3331_s23, %s3331_s23 }
 0x7a4   :  { %p4505_p12 = scmp.ne.s32.totalorder %s3331_s23, %s4504_s21  ;;  %p4510_p0 = scmp.lt.s32.totalorder %s4504_s21, %s4504_s21 }
 0x7a6   :  { %p4511_p1 = por %p4510_p0, %p4509_p13 }
 0x7a8   :  { %p4512_p2 = pnand %p4511_p1, %p4505_p12 }
 0x7aa   :  { %4515 = shalt.err (!%p4512_p2)
}
 0x7ab   :  { %s4516_s5 = scalar_lea.hbm %s5218_s17, 128 }
 0x7ac   :  { %p4517_p3 = scmp.ne.s32.totalorder %s5218_s17, %s4516_s5  ;;  %p4520_p4 = scmp.lt.u32.totalorder %s4516_s5, %s5218_s17 }
 0x7ae   :  { %p4522_p5 = pnand %p4520_p4, %p4517_p3 }
 0x7b0   :  { %4525 = shalt.err (!%p4522_p5)
}
 0x7b1   :  { %3333 = dma.vmem_to_hbm [thread:$0]  %s3331_s23, 128, %s5218_s17, [#allocation9]   ;;  %v4393_v63 = vld [vmem:[%s5236_s11] sm:$0xff] }
 0x7b2   :  { %s4593_s12 = smov [#allocation13]  }
 0x7b3   :  { %s3350_s16 = sshll.u32 %s4593_s12, 4  ;;  %s3351_s16 = int_to_ptr.vmem [resolvable:$true] %s3350_s16 }
 0x7b4   :  { %s4526_s29 = scalar_lea.vmem %s3351_s16, 128  ;;  %p4531_p7 = scmp.lt.s32.totalorder %s3351_s16, %s3351_s16 }
 0x7b5   :  { %p4527_p6 = scmp.ne.s32.totalorder %s3351_s16, %s4526_s29  ;;  %p4532_p8 = scmp.lt.s32.totalorder %s4526_s29, %s4526_s29 }
 0x7b7   :  { %p4533_p9 = por %p4532_p8, %p4531_p7 }
 0x7b9   :  { %p4534_p10 = pnand %p4533_p9, %p4527_p6 }
 0x7e8   :  { %v3295_v62 = vpop.permute.xlu1 %3294 }
 0x7e9   :  { %v3297_v1 = vmul.f32 %v4393_v63, %v3295_v62 }
 0x7eb   :  { %3299 = vrot.lane.b32.xlu0 %v3297_v1, %s4587_s14 }
 0x7ec   :  { %v3282_v2 = vpop.permute.xlu1 %3281 }
 0x7ed   :  { %3284 = vst.msk [vmem:[#allocation13] sm:$0xff] %vm3278_vm2, %v3282_v2 }
 0x7ee   :  { %4537 = shalt.err (!%p4534_p10)
}
 0x7ef   :  { %s4538_s23 = scalar_lea.hbm %s5220_s19, 128 }
 0x7f0   :  { %p4539_p11 = scmp.ne.s32.totalorder %s5220_s19, %s4538_s23  ;;  %p4542_p12 = scmp.lt.u32.totalorder %s4538_s23, %s5220_s19 }
 0x7f2   :  { %p4544_p13 = pnand %p4542_p12, %p4539_p11 }
 0x7f4   :  { %4547 = shalt.err (!%p4544_p13)
}
 0x7f5   :  { %3353 = dma.vmem_to_hbm [thread:$0]  %s3351_s16, 128, %s5220_s19, [#allocation12]  }
 0x7f6   :  { %s4594_s22 = smov [#allocation14]  }
 0x7f7   :  { %s3360_s2 = sshll.u32 %s4594_s22, 4  ;;  %s3361_s2 = int_to_ptr.vmem [resolvable:$true] %s3360_s2 }
 0x7f8   :  { %s4548_s18 = scalar_lea.vmem %s3361_s2, 128  ;;  %p4553_p1 = scmp.lt.s32.totalorder %s3361_s2, %s3361_s2 }
 0x7f9   :  { %p4549_p0 = scmp.ne.s32.totalorder %s3361_s2, %s4548_s18  ;;  %p4554_p2 = scmp.lt.s32.totalorder %s4548_s18, %s4548_s18 }
 0x7fb   :  { %p4555_p3 = por %p4554_p2, %p4553_p1 }
 0x7fd   :  { %p4556_p4 = pnand %p4555_p3, %p4549_p0 }
 0x85d   :  { %v3300_v17 = vpop.permute.xlu0 %3299 }
 0x85e   :  { %v3302_v3 = vadd.f32 %v3300_v17, %v5115_v45 }
 0x860   :  { %3303 = vst.msk [vmem:[#allocation14] sm:$0xff] %vm3278_vm2, %v3302_v3 }
 0x861   :  { %4559 = shalt.err (!%p4556_p4)
}
 0x862   :  { %s5237_s9 = sld [smem:[#allocation27_spill]] }
 0x868   :  { %s4560_s21 = scalar_lea.hbm %s5237_s9, 128 }
 0x869   :  { %p4561_p5 = scmp.ne.s32.totalorder %s5237_s9, %s4560_s21  ;;  %p4564_p6 = scmp.lt.u32.totalorder %s4560_s21, %s5237_s9 }
 0x86b   :  { %p4566_p7 = pnand %p4564_p6, %p4561_p5 }
 0x86d   :  { %4569 = shalt.err (!%p4566_p7)
}
 0x86e   :  { %3363 = dma.vmem_to_hbm [thread:$0]  %s3361_s2, 128, %s5237_s9, [#allocation15]  }
 0x86f   :  { %4574 = dma.done.wait [#allocation4], 128  }
 0x870   :  { %4575 = vsyncadd [#allocation4], 4294967168 }
 0x871   :  { %4576 = dma.done.wait [#allocation9], 256  }
 0x872   :  { %4577 = vsyncadd [#allocation9], 4294967040 }
 0x873   :  { %4578 = dma.done.wait [#allocation12], 256  }
 0x874   :  { %4579 = vsyncadd [#allocation12], 4294967040 }
 0x875   :  { %4580 = dma.done.wait [#allocation15], 128  }
 0x876   :  { %4581 = vsyncadd [#allocation15], 4294967168 }
 0x877   :  { %3382 = vsyncpa [#allocation3], 1 }
 0x878   :  { %3383 = vsyncpa [#allocation6], 1 }
 0x879   :  { %3384 = vsyncpa [#allocation4], 1 }
 0x87a   :  { %3385 = vsyncpa [#allocation9], 1 }
 0x87b   :  { %3386 = vsyncpa [#allocation12], 1 }
 0x87c   :  { %3387 = vsyncpa [#allocation15], 1 }

</bundles_post_ra>
